<compile_context>
chip_gen: v5e
topology: v5e:2x2
jax: 0.10.0
libtpu: 0.0.40
codegen_flags: <defaults>
</compile_context>

<pallas_src>
import numpy as np
import jax
import jax.numpy as jnp
from jax import lax
from jax.experimental import pallas as pl
from jax.experimental.pallas import tpu as pltpu


def graph_attention_forward(h_self, h_other, goal, action, params):
    """Accepts (n,m,f) single-graph or (B,n,m,f) batched inputs."""
    unbatched = (h_self.ndim == 3)
    if unbatched:
        h_self, h_other = h_self[None], h_other[None]
        goal, action = goal[None], action[None]

    B, n, m, f_in = h_self.shape
    n_head = params["w"].shape[0]
    f_out = params["w"].shape[-1]
    two_f = 2 * f_out
    ded = params["W1"].shape[-1]
    H = n_head * two_f                 # head-stacked hidden width (lane axis)
    nm = n * m
    f32 = jnp.float32
    assert f_in == f_out, "forward semantics require f_in == f_out (alpha * h_other)"
    assert m == n + 1
    inv_heads = 1.0 / float(n_head)
    hi = jax.lax.Precision.HIGHEST

    # ---------------- parameter prep (batch independent): fold + pack -----------------
    W1 = params["W1"].astype(f32)                           # (8, ded)  dist = [a_i,g_i,a_j,g_j]
    b1 = params["b1"].reshape(1, ded).astype(f32)
    W2 = params["W2"].astype(f32)                           # (ded, 2f)
    b2 = params["b2"].reshape(1, two_f).astype(f32)
    Wh = params["Wh"].astype(f32)                           # (2f, 2f), used as x @ Wh
    bh = params["bh"].reshape(1, two_f).astype(f32)
    bias = params["bias"].reshape(1, f_out).astype(f32)
    a_col = params["a"].reshape(two_f, 1).astype(f32)
    w3 = params["w"].reshape(n_head, f_in, f_out).astype(f32)

    # Fold w[h] into hidden_state_fc (valid: tanh follows both linear maps), head-major lanes.
    wf_self = jnp.einsum("hfo,oc->fhc", w3, Wh[:f_out], precision=hi).reshape(f_in, H)
    wf_other = jnp.einsum("hfo,oc->fhc", w3, Wh[f_out:], precision=hi).reshape(f_in, H)
    bh_t = jnp.tile(bh, (1, n_head))                        # (1, H)

    # Single block-diagonal weight: rows = [h_self(16) | h_other(16) | ag2(8) | ones(1)],
    # cols = [hidden pre-act (128) | distEmbedding pre-act (16)].
    zl = jnp.zeros((f_in, ded), f32)
    w_big = jnp.concatenate([
        jnp.concatenate([wf_self, zl], axis=1),
        jnp.concatenate([wf_other, zl], axis=1),
        jnp.concatenate([jnp.zeros((8, H), f32), W1], axis=1),
        jnp.concatenate([bh_t, b1], axis=1),                # bias row (uses ones column)
    ], axis=0)                                              # (2*f_in + 8 + 1, H + ded) = (41, 144)

    a_block = jnp.kron(jnp.eye(n_head, dtype=f32), a_col)   # (H, n_head) per-head score reducer
    bvec = jnp.concatenate([b2, bias], axis=1)              # (1, 2f + f_out) = [gateFC bias | out bias]

    # ---------------- activation-side layout glue (cheap XLA reshapes, per batch) -----
    hh = jnp.concatenate([h_self, h_other], axis=-1).astype(f32).reshape(B, nm, 2 * f_in)
    ag = jnp.concatenate([action, goal], axis=-1).astype(f32)            # (B, n, 4) = [a_i, g_i]
    dag = ag.shape[-1]
    ag_self = jnp.broadcast_to(ag[:, :, None, :], (B, n, m, dag)).reshape(B, nm, dag)
    ag_pad = jnp.concatenate([jnp.zeros((B, 1, dag), f32), ag], axis=1)  # slot 0 = self slot
    ag_nbr = jnp.broadcast_to(ag_pad[:, None, :, :], (B, n, m, dag)).reshape(B, nm, dag)
    ones_c = jnp.ones((B, nm, 1), f32)
    x_aug = jnp.concatenate([hh, ag_self, ag_nbr, ones_c], axis=-1)      # (B, nm, 41)
    xw = x_aug.shape[-1]

    # ---------------- fused kernel: one graph per grid step ---------------------------
    def kernel(x_ref, wbig_ref, w2_ref, ablk_ref, bvec_ref, out_ref):
        x = x_ref[...]                                                       # (nm, 41)
        # One merged MXU push: hidden pre-act (lanes 0:128) + dist-embedding pre-act (128:144).
        y = jnp.dot(x, wbig_ref[...], preferred_element_type=jnp.float32)    # (nm, H+ded)

        # ---- gate = sigmoid(gateFC(elu(distEmbedding(dist)))); dist never materialized
        embp = y[:, H:]                                                      # (nm, ded)
        emb = jnp.where(embp > 0, embp, jnp.exp(jnp.minimum(embp, 0.0)) - 1.0)   # ELU(alpha=1)
        gpre = (jnp.dot(emb, w2_ref[...], preferred_element_type=jnp.float32)
                + bvec_ref[:, :two_f])
        gate = 1.0 / (1.0 + jnp.exp(-gpre))                                  # (nm, 2f)

        # ---- segment one-hots generated in-kernel (no constant operands / DMAs)
        r_sa = lax.broadcasted_iota(jnp.int32, (nm, n), 0)                   # flat row id
        s_sa = lax.broadcasted_iota(jnp.int32, (nm, n), 1)                   # agent/segment id
        lo = s_sa * m
        sa = jnp.logical_and(r_sa >= lo, r_sa < lo + m).astype(jnp.float32)  # (nm, n) broadcast-back
        msk = jnp.sum((r_sa == lo).astype(jnp.float32), axis=1, keepdims=True)   # (nm,1): 1 on self slots
        gate = gate * (1.0 - msk) + msk                                      # self slot stays ungated

        # ---- temp = tanh(hidden_state_fc([h_self w | h_other w])), heads stacked on lanes
        temp = jnp.tanh(y[:, :H])                                            # (nm, H)
        gate_rep = jnp.concatenate([gate] * n_head, axis=1)                  # (nm, H) lane replication
        scores = jnp.dot(temp * gate_rep, ablk_ref[...],
                         preferred_element_type=jnp.float32)                 # (nm, n_head)
        scores = jnp.where(scores > 0, scores, 0.2 * scores)                 # LeakyReLU(0.2)

        # ---- softmax over the m slots per (agent, head); global-max shift is exact here
        gmax = jnp.max(jnp.max(scores, axis=1, keepdims=True), axis=0, keepdims=True)
        e = jnp.exp(scores - gmax)                                           # (nm, n_head)

        s_s = lax.broadcasted_iota(jnp.int32, (n, nm), 0)
        r_s = lax.broadcasted_iota(jnp.int32, (n, nm), 1)
        lo2 = s_s * m
        S = jnp.logical_and(r_s >= lo2, r_s < lo2 + m).astype(jnp.float32)   # (n, nm) segment-sum
        seg = jnp.dot(S, e, preferred_element_type=jnp.float32)              # (n, n_head)
        rec = pl.reciprocal(seg, approx=False)       # exact recip on the tiny tensor (keeps 1e-4 tol)
        alpha = e * jnp.dot(sa, rec, preferred_element_type=jnp.float32)     # (nm, n_head)

        # ---- mean over heads, weight ORIGINAL h_other, sum over m, relu, bias
        alpha_m = jnp.sum(alpha, axis=1, keepdims=True) * inv_heads          # (nm, 1)
        ho2 = x_ref[:, f_in:2 * f_in]                                        # re-read h_other (short live range)
        weighted = alpha_m * ho2                                             # (nm, f_out)
        out = jnp.dot(S, weighted, preferred_element_type=jnp.float32)       # (n, f_out)
        out_ref[...] = jnp.maximum(out, 0.0) + bvec_ref[:, two_f:]

    out = pl.pallas_call(
        kernel,
        out_shape=jax.ShapeDtypeStruct((B, n, f_out), f32),
        grid=(B,),
        in_specs=[
            pl.BlockSpec((None, nm, xw), lambda b: (b, 0, 0)),      # per-graph data (varies per step)
            pl.BlockSpec(w_big.shape, lambda b: (0, 0)),            # constants: fetched once
            pl.BlockSpec(W2.shape, lambda b: (0, 0)),
            pl.BlockSpec(a_block.shape, lambda b: (0, 0)),
            pl.BlockSpec(bvec.shape, lambda b: (0, 0)),
        ],
        out_specs=pl.BlockSpec((None, n, f_out), lambda b: (b, 0, 0)),
        compiler_params=pltpu.CompilerParams(dimension_semantics=("parallel",)),
    )(x_aug, w_big, W2, a_block, bvec)

    return out[0] if unbatched else out


# ----------------------------------------------------------------------------
# Pure-JAX reference mirroring the PyTorch forward exactly (for verification).
# ----------------------------------------------------------------------------
def reference_forward(h_self, h_other, goal, action, params):
    n, m, f_in = h_self.shape
    f_out = params["w"].shape[-1]
    two_f = 2 * f_out

    ag = jnp.concatenate([action, goal], axis=-1)
    dist = jnp.concatenate(
        [jnp.broadcast_to(ag[:, None, :], (n, n, ag.shape[-1])),
         jnp.broadcast_to(ag[None, :, :], (n, n, ag.shape[-1]))], axis=-1)
    g = dist @ params["W1"] + params["b1"]
    g = jnp.where(g > 0, g, jnp.exp(jnp.minimum(g, 0.0)) - 1.0)
    gate = jax.nn.sigmoid(g @ params["W2"] + params["b2"])               # (n, n, 2f)

    w = params["w"]                                                      # (n_head,1,f_in,f_out)
    hsp = jnp.matmul(h_self, w)                                          # (n_head,n,m,f_out)
    hop = jnp.matmul(h_other, w)
    hp = jnp.concatenate([hsp, hop], axis=-1)
    temp = jnp.tanh(hp @ params["Wh"] + params["bh"])
    temp_other = gate[None] * temp[:, :, 1:, :]
    hp2 = jnp.concatenate([temp[:, :, 0:1, :], temp_other], axis=2)
    scores = hp2 @ params["a"].reshape(two_f, 1)                         # (n_head,n,m,1)
    scores = jnp.where(scores > 0, scores, 0.2 * scores)
    alpha = jax.nn.softmax(scores, axis=-2)
    h_attn = alpha * h_other                                             # broadcast (f_in==f_out)
    out = jnp.mean(jnp.sum(h_attn, axis=-2), axis=0)
    return jnp.maximum(out, 0.0) + params["bias"]


if __name__ == "__main__":
    # Small shapes consistent with the module: n agents, m = n+1 (self + others),
    # goal/action are 2-D each so cat([a_i,g_i,a_j,g_j]) has dim 8 == distEmbedding in-dim.
    n_head, f_in, f_out = 4, 16, 16
    distance_embedding_dim = 16
    n = 8
    m = n + 1
    B = 16                                   # graphs batched through the grid

    key = jax.random.PRNGKey(0)
    ks = jax.random.split(key, 12)

    def xavier(k, shape, gain=1.414):
        fan_in, fan_out = shape[-2], shape[-1]
        lim = gain * np.sqrt(6.0 / (fan_in + fan_out))
        return jax.random.uniform(k, shape, jnp.float32, -lim, lim)

    def linear_init(kw, kb, fin, fo):
        lim = 1.0 / np.sqrt(fin)
        W = jax.random.uniform(kw, (fin, fo), jnp.float32, -lim, lim)   # stored as x @ W
        b = jax.random.uniform(kb, (fo,), jnp.float32, -lim, lim)
        return W, b

    W1, b1 = linear_init(ks[2], ks[3], 8, distance_embedding_dim)          # distEmbedding
    W2, b2 = linear_init(ks[4], ks[5], distance_embedding_dim, 2 * f_out)  # gateFC
    Wh, bh = linear_init(ks[6], ks[7], 2 * f_out, 2 * f_out)               # hidden_state_fc

    params = {
        "w": xavier(ks[0], (n_head, 1, f_in, f_out)),
        "a": xavier(ks[1], (1, 1, 2 * f_out, 1)),
        "bias": jnp.zeros((f_out,), jnp.float32),                          # nn.init.constant_(bias, 0)
        "W1": W1, "b1": b1.reshape(1, -1),
        "W2": W2, "b2": b2.reshape(1, -1),
        "Wh": Wh, "bh": bh,
    }

    h_self = jax.random.normal(ks[8], (B, n, m, f_in), jnp.float32)
    h_other = jax.random.normal(ks[9], (B, n, m, f_in), jnp.float32)
    goal = jax.random.normal(ks[10], (B, n, 2), jnp.float32)
    action = jax.random.normal(ks[11], (B, n, 2), jnp.float32)

    fwd = jax.jit(graph_attention_forward)

    # Batched path (one pallas_call, grid over B graphs).
    out = jax.block_until_ready(fwd(h_self, h_other, goal, action, params))
    ref = jax.vmap(lambda hs, ho, g, a: reference_forward(hs, ho, g, a, params))(
        h_self, h_other, goal, action)
    np.testing.assert_allclose(np.asarray(out), np.asarray(ref), rtol=1e-4, atol=1e-4)

    # Single-graph path (original module signature).
    out1 = jax.block_until_ready(fwd(h_self[0], h_other[0], goal[0], action[0], params))
    np.testing.assert_allclose(np.asarray(out1), np.asarray(ref[0]), rtol=1e-4, atol=1e-4)

    print("KERNEL_OK")
</pallas_src>

<mosaic_0001>
module attributes {stable_mosaic.version = 11 : i64} {
  func.func @kernel(%arg0: i32, %arg1: memref<1x72x41xf32, #tpu.memory_space<vmem>>, %arg2: memref<41x144xf32, #tpu.memory_space<vmem>>, %arg3: memref<16x32xf32, #tpu.memory_space<vmem>>, %arg4: memref<128x4xf32, #tpu.memory_space<vmem>>, %arg5: memref<1x48xf32, #tpu.memory_space<vmem>>, %arg6: memref<1x8x16xf32, #tpu.memory_space<vmem>>) attributes {dimension_semantics = [#tpu.dimension_semantics<parallel>], iteration_bounds = array<i64: 16>, scalar_prefetch = 0 : i64, scratch_operands = 0 : i64, tpu.core_type = #tpu.core_type<tc>, window_params = [{transform_indices = @transform_0, window_bounds = array<i64: 1, 72, 41>}, {pipeline_mode = #tpu.pipeline_mode<synchronous>, transform_indices = @transform_1, window_bounds = array<i64: 41, 144>}, {pipeline_mode = #tpu.pipeline_mode<synchronous>, transform_indices = @transform_2, window_bounds = array<i64: 16, 32>}, {pipeline_mode = #tpu.pipeline_mode<synchronous>, transform_indices = @transform_3, window_bounds = array<i64: 128, 4>}, {pipeline_mode = #tpu.pipeline_mode<synchronous>, transform_indices = @transform_4, window_bounds = array<i64: 1, 48>}, {transform_indices = @transform_5, window_bounds = array<i64: 1, 8, 16>}]} {
    %c0 = arith.constant 0 : index
    %c0_0 = arith.constant 0 : index
    %c0_1 = arith.constant 0 : index
    %0 = vector.load %arg1[%c0, %c0_0, %c0_1] : memref<1x72x41xf32, #tpu.memory_space<vmem>>, vector<1x72x41xf32>
    %1 = vector.shape_cast %0 : vector<1x72x41xf32> to vector<72x41xf32>
    %c0_2 = arith.constant 0 : index
    %c0_3 = arith.constant 0 : index
    %2 = vector.load %arg2[%c0_2, %c0_3] : memref<41x144xf32, #tpu.memory_space<vmem>>, vector<41x144xf32>
    %cst = arith.constant dense<0.000000e+00> : vector<72x144xf32>
    %3 = tpu.matmul %1, %2, %cst {dimension_numbers = #tpu.dot_dimension_numbers<[1], [0], [0], [1], [0, 0, 1, 1], [], []>} : vector<72x41xf32>, vector<41x144xf32>, vector<72x144xf32> -> vector<72x144xf32>
    %4 = vector.extract_strided_slice %3 {offsets = [0, 128], sizes = [72, 16], strides = [1, 1]} : vector<72x144xf32> to vector<72x16xf32>
    %cst_4 = arith.constant 0.000000e+00 : f32
    %5 = vector.broadcast %cst_4 : f32 to vector<72x16xf32>
    %6 = arith.cmpf ogt, %4, %5 : vector<72x16xf32>
    %cst_5 = arith.constant 0.000000e+00 : f32
    %7 = vector.broadcast %cst_5 : f32 to vector<72x16xf32>
    %8 = arith.minimumf %4, %7 : vector<72x16xf32>
    %9 = math.exp %8 : vector<72x16xf32>
    %cst_6 = arith.constant 1.000000e+00 : f32
    %10 = vector.broadcast %cst_6 : f32 to vector<72x16xf32>
    %11 = arith.subf %9, %10 : vector<72x16xf32>
    %12 = arith.select %6, %4, %11 : vector<72x16xi1>, vector<72x16xf32>
    %c0_7 = arith.constant 0 : index
    %c0_8 = arith.constant 0 : index
    %13 = vector.load %arg3[%c0_7, %c0_8] : memref<16x32xf32, #tpu.memory_space<vmem>>, vector<16x32xf32>
    %cst_9 = arith.constant dense<0.000000e+00> : vector<72x32xf32>
    %14 = tpu.matmul %12, %13, %cst_9 {dimension_numbers = #tpu.dot_dimension_numbers<[1], [0], [0], [1], [0, 0, 1, 1], [], []>} : vector<72x16xf32>, vector<16x32xf32>, vector<72x32xf32> -> vector<72x32xf32>
    %c0_10 = arith.constant 0 : index
    %c0_11 = arith.constant 0 : index
    %15 = vector.load %arg5[%c0_10, %c0_11] : memref<1x48xf32, #tpu.memory_space<vmem>>, vector<1x32xf32>
    %16 = vector.broadcast %15 : vector<1x32xf32> to vector<72x32xf32>
    %17 = arith.addf %14, %16 : vector<72x32xf32>
    %cst_12 = arith.constant 0.000000e+00 : f32
    %18 = vector.broadcast %cst_12 : f32 to vector<72x32xf32>
    %19 = arith.subf %18, %17 : vector<72x32xf32>
    %20 = math.exp %19 : vector<72x32xf32>
    %cst_13 = arith.constant 1.000000e+00 : f32
    %21 = vector.broadcast %cst_13 : f32 to vector<72x32xf32>
    %22 = arith.addf %21, %20 : vector<72x32xf32>
    %cst_14 = arith.constant 1.000000e+00 : f32
    %23 = vector.broadcast %cst_14 : f32 to vector<72x32xf32>
    %24 = arith.divf %23, %22 : vector<72x32xf32>
    %25 = tpu.iota {dimensions = array<i32: 0>} : vector<72x8xi32>
    %26 = tpu.iota {dimensions = array<i32: 1>} : vector<72x8xi32>
    %c9_i32 = arith.constant 9 : i32
    %27 = vector.broadcast %c9_i32 : i32 to vector<72x8xi32>
    %28 = arith.muli %26, %27 : vector<72x8xi32>
    %29 = arith.cmpi sge, %25, %28 : vector<72x8xi32>
    %c9_i32_15 = arith.constant 9 : i32
    %30 = vector.broadcast %c9_i32_15 : i32 to vector<72x8xi32>
    %31 = arith.addi %28, %30 : vector<72x8xi32>
    %32 = arith.cmpi slt, %25, %31 : vector<72x8xi32>
    %33 = arith.andi %29, %32 : vector<72x8xi1>
    %34 = arith.extui %33 : vector<72x8xi1> to vector<72x8xi32>
    %35 = arith.sitofp %34 : vector<72x8xi32> to vector<72x8xf32>
    %36 = arith.cmpi eq, %25, %28 : vector<72x8xi32>
    %37 = arith.extui %36 : vector<72x8xi1> to vector<72x8xi32>
    %38 = arith.sitofp %37 : vector<72x8xi32> to vector<72x8xf32>
    %cst_16 = arith.constant dense<0.000000e+00> : vector<72xf32>
    %39 = vector.multi_reduction <add>, %38, %cst_16 [1] : vector<72x8xf32> to vector<72xf32>
    %40 = vector.shape_cast %39 : vector<72xf32> to vector<72x1xf32>
    %cst_17 = arith.constant 1.000000e+00 : f32
    %41 = vector.broadcast %cst_17 : f32 to vector<72x1xf32>
    %42 = arith.subf %41, %40 : vector<72x1xf32>
    %43 = vector.broadcast %42 : vector<72x1xf32> to vector<72x32xf32>
    %44 = arith.mulf %24, %43 : vector<72x32xf32>
    %45 = vector.broadcast %40 : vector<72x1xf32> to vector<72x32xf32>
    %46 = arith.addf %44, %45 : vector<72x32xf32>
    %47 = vector.extract_strided_slice %3 {offsets = [0, 0], sizes = [72, 128], strides = [1, 1]} : vector<72x144xf32> to vector<72x128xf32>
    %48 = math.tanh %47 : vector<72x128xf32>
    %49 = tpu.concatenate %46, %46, %46, %46 in 1 : vector<72x32xf32>, vector<72x32xf32>, vector<72x32xf32>, vector<72x32xf32> -> vector<72x128xf32>
    %50 = arith.mulf %48, %49 : vector<72x128xf32>
    %c0_18 = arith.constant 0 : index
    %c0_19 = arith.constant 0 : index
    %51 = vector.load %arg4[%c0_18, %c0_19] : memref<128x4xf32, #tpu.memory_space<vmem>>, vector<128x4xf32>
    %cst_20 = arith.constant dense<0.000000e+00> : vector<72x4xf32>
    %52 = tpu.matmul %50, %51, %cst_20 {dimension_numbers = #tpu.dot_dimension_numbers<[1], [0], [0], [1], [0, 0, 1, 1], [], []>} : vector<72x128xf32>, vector<128x4xf32>, vector<72x4xf32> -> vector<72x4xf32>
    %cst_21 = arith.constant 0.000000e+00 : f32
    %53 = vector.broadcast %cst_21 : f32 to vector<72x4xf32>
    %54 = arith.cmpf ogt, %52, %53 : vector<72x4xf32>
    %cst_22 = arith.constant 2.000000e-01 : f32
    %55 = vector.broadcast %cst_22 : f32 to vector<72x4xf32>
    %56 = arith.mulf %55, %52 : vector<72x4xf32>
    %57 = arith.select %54, %52, %56 : vector<72x4xi1>, vector<72x4xf32>
    %cst_23 = arith.constant dense<0xFF800000> : vector<72xf32>
    %58 = vector.multi_reduction <maximumf>, %57, %cst_23 [1] : vector<72x4xf32> to vector<72xf32>
    %59 = vector.shape_cast %58 : vector<72xf32> to vector<72x1xf32>
    %cst_24 = arith.constant dense<0xFF800000> : vector<1xf32>
    %60 = vector.multi_reduction <maximumf>, %59, %cst_24 [0] : vector<72x1xf32> to vector<1xf32>
    %61 = vector.shape_cast %60 : vector<1xf32> to vector<1x1xf32>
    %62 = vector.broadcast %61 : vector<1x1xf32> to vector<72x4xf32>
    %63 = arith.subf %57, %62 : vector<72x4xf32>
    %64 = math.exp %63 : vector<72x4xf32>
    %65 = tpu.iota {dimensions = array<i32: 0>} : vector<8x72xi32>
    %66 = tpu.iota {dimensions = array<i32: 1>} : vector<8x72xi32>
    %c9_i32_25 = arith.constant 9 : i32
    %67 = vector.broadcast %c9_i32_25 : i32 to vector<8x72xi32>
    %68 = arith.muli %65, %67 : vector<8x72xi32>
    %69 = arith.cmpi sge, %66, %68 : vector<8x72xi32>
    %c9_i32_26 = arith.constant 9 : i32
    %70 = vector.broadcast %c9_i32_26 : i32 to vector<8x72xi32>
    %71 = arith.addi %68, %70 : vector<8x72xi32>
    %72 = arith.cmpi slt, %66, %71 : vector<8x72xi32>
    %73 = arith.andi %69, %72 : vector<8x72xi1>
    %74 = arith.extui %73 : vector<8x72xi1> to vector<8x72xi32>
    %75 = arith.sitofp %74 : vector<8x72xi32> to vector<8x72xf32>
    %cst_27 = arith.constant dense<0.000000e+00> : vector<8x4xf32>
    %76 = tpu.matmul %75, %64, %cst_27 {dimension_numbers = #tpu.dot_dimension_numbers<[1], [0], [0], [1], [0, 0, 1, 1], [], []>} : vector<8x72xf32>, vector<72x4xf32>, vector<8x4xf32> -> vector<8x4xf32>
    %77 = tpu.reciprocal %76 : vector<8x4xf32> -> vector<8x4xf32>
    %cst_28 = arith.constant dense<0.000000e+00> : vector<72x4xf32>
    %78 = tpu.matmul %35, %77, %cst_28 {dimension_numbers = #tpu.dot_dimension_numbers<[1], [0], [0], [1], [0, 0, 1, 1], [], []>} : vector<72x8xf32>, vector<8x4xf32>, vector<72x4xf32> -> vector<72x4xf32>
    %79 = arith.mulf %64, %78 : vector<72x4xf32>
    %cst_29 = arith.constant dense<0.000000e+00> : vector<72xf32>
    %80 = vector.multi_reduction <add>, %79, %cst_29 [1] : vector<72x4xf32> to vector<72xf32>
    %81 = vector.shape_cast %80 : vector<72xf32> to vector<72x1xf32>
    %cst_30 = arith.constant 2.500000e-01 : f32
    %82 = vector.broadcast %cst_30 : f32 to vector<72x1xf32>
    %83 = arith.mulf %81, %82 : vector<72x1xf32>
    %c0_31 = arith.constant 0 : index
    %c0_32 = arith.constant 0 : index
    %c16 = arith.constant 16 : index
    %84 = vector.load %arg1[%c0_31, %c0_32, %c16] : memref<1x72x41xf32, #tpu.memory_space<vmem>>, vector<1x72x16xf32>
    %85 = vector.shape_cast %84 : vector<1x72x16xf32> to vector<72x16xf32>
    %86 = vector.broadcast %83 : vector<72x1xf32> to vector<72x16xf32>
    %87 = arith.mulf %86, %85 : vector<72x16xf32>
    %cst_33 = arith.constant dense<0.000000e+00> : vector<8x16xf32>
    %88 = tpu.matmul %75, %87, %cst_33 {dimension_numbers = #tpu.dot_dimension_numbers<[1], [0], [0], [1], [0, 0, 1, 1], [], []>} : vector<8x72xf32>, vector<72x16xf32>, vector<8x16xf32> -> vector<8x16xf32>
    %cst_34 = arith.constant 0.000000e+00 : f32
    %89 = vector.broadcast %cst_34 : f32 to vector<8x16xf32>
    %90 = arith.maximumf %88, %89 : vector<8x16xf32>
    %c0_35 = arith.constant 0 : index
    %c32 = arith.constant 32 : index
    %91 = vector.load %arg5[%c0_35, %c32] : memref<1x48xf32, #tpu.memory_space<vmem>>, vector<1x16xf32>
    %92 = vector.broadcast %91 : vector<1x16xf32> to vector<8x16xf32>
    %93 = arith.addf %90, %92 : vector<8x16xf32>
    %c0_36 = arith.constant 0 : index
    %c0_37 = arith.constant 0 : index
    %c0_38 = arith.constant 0 : index
    %94 = vector.load %arg6[%c0_36, %c0_37, %c0_38] : memref<1x8x16xf32, #tpu.memory_space<vmem>>, vector<1x8x16xf32>
    %95 = vector.shape_cast %94 : vector<1x8x16xf32> to vector<8x16xf32>
    %96 = vector.shape_cast %93 : vector<8x16xf32> to vector<1x8x16xf32>
    tpu.vector_store %arg6[%c0_36, %c0_37, %c0_38], %96 {strides = array<i32>} : memref<1x8x16xf32, #tpu.memory_space<vmem>>, vector<1x8x16xf32>,
    return
  }
  func.func @transform_0(%arg0: i32) -> (i32, i32, i32) {
    %c0_i32 = arith.constant 0 : i32
    %c0_i32_0 = arith.constant 0 : i32
    %c0_i32_1 = arith.constant 0 : i32
    return %arg0, %c0_i32, %c0_i32_0 : i32, i32, i32
  }
  func.func @transform_1(%arg0: i32) -> (i32, i32) {
    %c0_i32 = arith.constant 0 : i32
    %c0_i32_0 = arith.constant 0 : i32
    %c0_i32_1 = arith.constant 0 : i32
    return %c0_i32, %c0_i32_0 : i32, i32
  }
  func.func @transform_2(%arg0: i32) -> (i32, i32) {
    %c0_i32 = arith.constant 0 : i32
    %c0_i32_0 = arith.constant 0 : i32
    %c0_i32_1 = arith.constant 0 : i32
    return %c0_i32, %c0_i32_0 : i32, i32
  }
  func.func @transform_3(%arg0: i32) -> (i32, i32) {
    %c0_i32 = arith.constant 0 : i32
    %c0_i32_0 = arith.constant 0 : i32
    %c0_i32_1 = arith.constant 0 : i32
    return %c0_i32, %c0_i32_0 : i32, i32
  }
  func.func @transform_4(%arg0: i32) -> (i32, i32) {
    %c0_i32 = arith.constant 0 : i32
    %c0_i32_0 = arith.constant 0 : i32
    %c0_i32_1 = arith.constant 0 : i32
    return %c0_i32, %c0_i32_0 : i32, i32
  }
  func.func @transform_5(%arg0: i32) -> (i32, i32, i32) {
    %c0_i32 = arith.constant 0 : i32
    %c0_i32_0 = arith.constant 0 : i32
    %c0_i32_1 = arith.constant 0 : i32
    return %arg0, %c0_i32, %c0_i32_0 : i32, i32, i32
  }
}

</mosaic_0001>

<bundles_post_ra>
// kernel: graph_attention_forward.1
= control target key start
LH: loop header
LB: loop body
LE: loop exit
PB: predicated region body
PF: predicated region fallthrough
CT: control target
= control target key end

     0   :  { %10 = vsyncpa [#allocation3], 0  ;;  %s2361_s0 = inlined_call_operand.vmem [shape: f32[16,72,41], index: 0, kind: input, shape index: {}]   ;;  %s2362_s1 = inlined_call_operand.vmem [shape: f32[41,144], index: 1, kind: input, shape index: {}]   ;;  %s2363_s2 = inlined_call_operand.vmem [shape: f32[16,32], index: 2, kind: input, shape index: {}]   ;;  %s2364_s3 = inlined_call_operand.vmem [shape: f32[128,4], index: 3, kind: input, shape index: {}]   ;;  %s2365_s4 = inlined_call_operand.vmem [shape: f32[1,48], index: 4, kind: input, shape index: {}]   ;;  %s2366_s5 = inlined_call_operand.hbm [shape: f32[16,8,16], index: 5, kind: output, shape index: {}]  }
   0x1   :  { %12 = vsyncpa [#allocation3 + $0x1], 0  ;;  %s1758_s18 = smov 0   ;;  %s1760_s19 = smov 0  }
   0x2   :  { %s1762_s20 = smov 0   ;;  %s1764_s21 = smov 0  }
   0x3 LB: > { %s1779_s22 = sadd.s32 4294967295, %s1721_s21   ;;  %s1412_s23 = sadd.s32 4294967294, %s1721_s21   ;;  %s1721_s21 = sphi %s1764_s21, %s2374_s21   ;;  %s1717_s20 = sphi %s1762_s20, %s2373_s20   ;;  %s1713_s19 = sphi %s1760_s19, %s2372_s19   ;;  %s1709_s18 = sphi %s1758_s18, %s2371_s18  }
   0x4   : > { %s1783_s24 = sadd.s32 1, %s1721_s21   ;;  %s135_s25 = sadd.s32 1, %s1717_s20 }
   0x5   : > { %s132_s26 = ssub.s32 %s1721_s21, %s1783_s24  ;;  %p145_p0 = scmp.ne.s32.totalorder %s1717_s20, %s1713_s19 }
   0x6   : > { %p133_p1 = scmp.eq.s32.totalorder %s132_s26, 0  ;;  %p146_p2 = scmp.eq.s32.totalorder %s1779_s22, 15 }
   0x7   : > { %p151_p3 = scmp.ne.s32.totalorder %s1713_s19, %s1709_s18  ;;  %p152_p4 = scmp.eq.s32.totalorder %s1412_s23, 15 }
   0x8   : > { %s1794_s27 = scalar_select %p133_p1, %s1717_s20, %s135_s25  }
   0x9   : > { %p1796_p5 = por %p146_p2, %p145_p0  ;;  %p1800_p6 = por %p152_p4, %p151_p3 }
   0xa   : > { %p1415_p7 = scmp.ge.s32.totalorder %s1721_s21, 1  ;;  %p190_p8 = scmp.lt.s32.totalorder %s1721_s21, 17 }
   0xc   : > { %p191_p9 = pnand %p1415_p7, %p190_p8 }
   0xd   : > { %p218_p10 = scmp.lt.s32.totalorder (!%p191_p9), %s1779_s22, 15  ;;  %s1724_s9 = smov (!%p191_p9), 96  }
   0xe   : > { %194 = sbr.rel (%p191_p9) target bundleno = 1639 (0x667), region = 40  ;;  %s1725_s10 = smov (!%p191_p9), 64  }
   0xf   : > { %s1487_s6 = sshll.u32 (!%p191_p9), %s1779_s22, 3 }
  0x10   : > { %s1348_s12 = scalar_lea.hbm (!%p191_p9), %s2366_s5, %s1487_s6 }
  0x11   : > { %s1352_s15 = sshll.u32 (!%p191_p9), %s1348_s12, 4  ;;  %s1353_s15 = int_to_ptr.hbm [resolvable:$true] %s1352_s15 }
  0x12   : > { %s1673_s17 = sshra.s32 (!%p191_p9), %s1353_s15, 4  ;;  %s1674_s17 = int_to_ptr.hbm [resolvable:$true] %s1673_s17 }
  0x13   : > { %v243_v0 = vld [vmem:[%s2362_s1 + $0x58] sm:$0x1]  ;;  %vm272_vm0 = vcmask 1040384   ;;  %v241_v1 = vld [vmem:[%s2362_s1 + $0x48] sm:$0xff]  ;;  %s219_s11 = scalar_select %p218_p10, %s1779_s22, 15  ;;  %vm244_vm1 = vcmask 334848   ;;  %v670_v20 = vlaneseq }
  0x14   : > { %1428 = vmatpush.msk.msra.mxu1 %vm272_vm0, %v243_v0  ;;  %v239_v2 = vld [vmem:[%s2362_s1 + $0x38] sm:$0xff]  ;;  %v237_v3 = vld [vmem:[%s2362_s1 + $0x28] sm:$0xff]  ;;  %v421_v14 = vld [vmem:[%s2363_s2] sm:$0xff]  ;;  %vm427_vm2 = vcmask 130048   ;;  %vm756_vm3 = vcmask 64512   ;;  %v1723_v30 = vmov 0.0   ;;  %p1680_p0 = scmp.lt.s32.totalorder %s1674_s17, %s2366_s5 }
  0x15   : > { %s1491_s14 = smul.u32 72, %s219_s11  ;;  %v235_v4 = vld [vmem:[%s2362_s1 + $0x18] sm:$0xff]  ;;  %v233_v5 = vld [vmem:[%s2362_s1 + $0x8] sm:$0xff]  ;;  %v1883_v23 = vshrl.u32 %v670_v20, 7  ;;  %v1885_v24 = vand.u32 127, %v670_v20  ;;  %s1726_s11 = smov 32  }
  0x16   : > { %334 = vmatpush.msra.mxu1 %v241_v1  ;;  %v422_v13 = vld [vmem:[%s2363_s2 + $0x8] sm:$0xff]  ;;  %s1675_s22 = scalar_lea.hbm %s1674_s17, 8 }
  0x17   : > { %s1827_s25 = scalar_lea.vmem %s2361_s0, %s1491_s14  ;;  %469 = vmatpush.msra.mxu2 %v422_v13  ;;  %v1888_v27 = vmul.u32 9, %v1885_v24  ;;  %v1896_v33 = vadd.s32 8, %v1883_v23  ;;  %v1899_v34 = vadd.s32 16, %v1883_v23  ;;  %v1911_v45 = vadd.s32 24, %v1883_v23  ;;  %p1676_p11 = scmp.ne.s32.totalorder %s1674_s17, %s1675_s22 }
  0x18   : > { %335 = vmatpush.msra.mxu1 %v239_v2  ;;  %v1833_v6 = vld [vmem:[%s1827_s25] sm:$0xff]  ;;  %v1838_v7 = vld [vmem:[%s1827_s25 + $0x8] sm:$0xff]  ;;  %v1843_v8 = vld [vmem:[%s1827_s25 + $0x10] sm:$0xff]  ;;  %v1919_v54 = vadd.s32 32, %v1883_v23  ;;  %v1922_v55 = vadd.s32 40, %v1883_v23 }
  0x19   : > { %v1848_v9 = vld [vmem:[%s1827_s25 + $0x18] sm:$0xff]  ;;  %v1853_v10 = vld [vmem:[%s1827_s25 + $0x20] sm:$0xff]  ;;  %v1858_v11 = vld [vmem:[%s1827_s25 + $0x28] sm:$0xff]  ;;  %470 = vmatpush.msra.mxu2 %v421_v14  ;;  %vm729_vm5 = vcmp.eq.s32.totalorder %v1883_v23, %v1888_v27  ;;  %vm730_vm6 = vcmp.eq.s32.totalorder %v1896_v33, %v1888_v27  ;;  %vm731_vm7 = vcmp.eq.s32.totalorder %v1899_v34, %v1888_v27  ;;  %vm732_vm9 = vcmp.eq.s32.totalorder %v1911_v45, %v1888_v27  ;;  %p1677_p12 = pnand %p1676_p11, %p1796_p5 }
  0x1a   : > { %336 = vmatpush.msra.mxu1 %v237_v3  ;;  %v1863_v12 = vld [vmem:[%s1827_s25 + $0x30] sm:$0xff]  ;;  %v1874_v15 = vld [vmem:[%s1827_s25 + $0x38] sm:$0xff]  ;;  %v1879_v16 = vld [vmem:[%s1827_s25 + $0x40] sm:$0xff]  ;;  %v1465_v31 = vsel %vm729_vm5, 1.0, %v1723_v30  ;;  %v1466_v37 = vsel %vm730_vm6, 1.0, %v1723_v30  ;;  %v1467_v38 = vsel %vm731_vm7, 1.0, %v1723_v30  ;;  %vm733_vm11 = vcmp.eq.s32.totalorder %v1919_v54, %v1888_v27 }
  0x1b   : > { %v757_v32 = vsel %vm756_vm3, %v1465_v31, 0.0  ;;  %v763_v41 = vsel %vm756_vm3, %v1467_v38, 0.0  ;;  %v760_v43 = vsel %vm756_vm3, %v1466_v37, 0.0  ;;  %v1468_v48 = vsel %vm732_vm9, 1.0, %v1723_v30  ;;  %p1678_p13 = pneg %p1677_p12 }
  0x1c   : > { %337 = vmatpush.msra.mxu1 %v235_v4  ;;  %758 = vadd.xlane.f32.xlu0 %v757_v32  ;;  %v766_v51 = vsel %vm756_vm3, %v1468_v48, 0.0  ;;  %v1469_v58 = vsel %vm733_vm11, 1.0, %v1723_v30  ;;  %vm734_vm13 = vcmp.eq.s32.totalorder %v1922_v55, %v1888_v27  ;;  %v236_v48 = vld [vmem:[%s2362_s1 + $0x20] sm:$0xff] }
  0x1d   : > { %764 = vadd.xlane.f32.xlu1 %v763_v41  ;;  %v769_v61 = vsel %vm756_vm3, %v1469_v58, 0.0  ;;  %v1470_v0 = vsel %vm734_vm13, 1.0, %v1723_v30 }
  0x1e   : > { %338 = vmatpush.msra.mxu1 %v233_v5  ;;  %770 = vadd.xlane.f32.xlu2 %v769_v61  ;;  %v772_v3 = vsel %vm756_vm3, %v1470_v0, 0.0 }
  0x1f   : > { %1429 = vmatmul.msk.f32.vlgmr.msra.gmra.mxu1 %vm244_vm1, %v1833_v6 }
  0x24   : > { %761 = vadd.xlane.f32.xlu0 %v760_v43  ;;  %v240_v43 = vld [vmem:[%s2362_s1 + $0x40] sm:$0xff] }
  0x25   : > { %767 = vadd.xlane.f32.xlu1 %v766_v51  ;;  %v232_v51 = vld [vmem:[%s2362_s1] sm:$0xff] }
  0x26   : > { %773 = vadd.xlane.f32.xlu2 %v772_v3 }
  0x27   : > { %1430 = vmatmul.msk.f32.gmra.mxu1 %vm244_vm1, %v1838_v7 }
  0x2f   : > { %1431 = vmatmul.msk.f32.gmra.mxu1 %vm244_vm1, %v1843_v8 }
  0x37   : > { %1432 = vmatmul.msk.f32.gmra.mxu1 %vm244_vm1, %v1848_v9 }
  0x3f   : > { %1433 = vmatmul.msk.f32.gmra.mxu1 %vm244_vm1, %v1853_v10 }
  0x47   : > { %1434 = vmatmul.msk.f32.gmra.mxu1 %vm244_vm1, %v1858_v11 }
  0x4f   : > { %1435 = vmatmul.msk.f32.gmra.mxu1 %vm244_vm1, %v1863_v12 }
  0x57   : > { %1436 = vmatmul.msk.f32.gmra.mxu1 %vm244_vm1, %v1874_v15 }
  0x5f   : > { %1437 = vmatmul.msk.f32.gmra.mxu1 %vm244_vm1, %v1879_v16 }
  0x9c   : > { %v340_v17 = vpop.f32.mrf.mxu1 }
  0x9d   : > { %v376_v18 = vmin.f32 %v340_v17, 0.0  ;;  %vm367_vm4 = vcmp.gt.f32.partialorder %v340_v17, 0.0 }
  0x9f   : > { %v385_v19 = vmul.f32 1.442695, %v376_v18 }
  0xa1   : > { %1557 = vpow2.f32 %v385_v19 }
  0xa4   : > { %v343_v21 = vpop.f32.mrf.mxu1 }
  0xa5   : > { %v377_v22 = vmin.f32 %v343_v21, 0.0  ;;  %vm368_vm8 = vcmp.gt.f32.partialorder %v343_v21, 0.0 }
  0xa7   : > { %v1558_v25 = vpop.eup %1557  ;;  %v387_v26 = vmul.f32 1.442695, %v377_v22 }
  0xa8   : > { %v1438_v28 = vadd.f32 -1.0, %v1558_v25 }
  0xa9   : > { %1559 = vpow2.f32 %v387_v26 }
  0xaa   : > { %v412_v29 = vsel %vm367_vm4, %v340_v17, %v1438_v28 }
  0xab   : > { %1447 = vmatmul.msk.f32.vlgmr.msra.gmra.mxu2 %vm427_vm2, %v412_v29  ;;  %v1937_v29 = vadd.s32 48, %v1883_v23 }
  0xac   : > { %v346_v35 = vpop.f32.mrf.mxu1 }
  0xad   : > { %v378_v36 = vmin.f32 %v346_v35, 0.0  ;;  %vm369_vm10 = vcmp.gt.f32.partialorder %v346_v35, 0.0  ;;  %vm735_vm5 = vcmp.eq.s32.totalorder %v1937_v29, %v1888_v27 }
  0xae   : > { %v1471_v31 = vsel %vm735_vm5, 1.0, %v1723_v30 }
  0xaf   : > { %v1560_v39 = vpop.eup %1559  ;;  %v389_v40 = vmul.f32 1.442695, %v378_v36 }
  0xb0   : > { %v1439_v42 = vadd.f32 -1.0, %v1560_v39 }
  0xb1   : > { %1561 = vpow2.f32 %v389_v40  ;;  %v242_v40 = vld [vmem:[%s2362_s1 + $0x50] sm:$0x1] }
  0xb2   : > { %v413_v44 = vsel %vm368_vm8, %v343_v21, %v1439_v42  ;;  %1418 = vmatpush.msk.msra.mxu0 %vm272_vm0, %v242_v40 }
  0xb3   : > { %1448 = vmatmul.msk.f32.gmra.mxu2 %vm427_vm2, %v413_v44 }
  0xb4   : > { %v349_v46 = vpop.f32.mrf.mxu1  ;;  %290 = vmatpush.msra.mxu0 %v240_v43 }
  0xb5   : > { %v379_v47 = vmin.f32 %v349_v46, 0.0  ;;  %vm370_vm12 = vcmp.gt.f32.partialorder %v349_v46, 0.0 }
  0xb7   : > { %v1562_v49 = vpop.eup %1561  ;;  %v391_v50 = vmul.f32 1.442695, %v379_v47 }
  0xb8   : > { %v1440_v52 = vadd.f32 -1.0, %v1562_v49  ;;  %v234_v49 = vld [vmem:[%s2362_s1 + $0x10] sm:$0xff] }
  0xb9   : > { %1563 = vpow2.f32 %v391_v50 }
  0xba   : > { %v414_v53 = vsel %vm369_vm10, %v346_v35, %v1440_v52  ;;  %v775_v35 = vsel %vm756_vm3, %v1471_v31, 0.0 }
  0xbb   : > { %1449 = vmatmul.msk.f32.gmra.mxu2 %vm427_vm2, %v414_v53  ;;  %776 = vadd.xlane.f32.xlu2 %v775_v35 }
  0xbc   : > { %v352_v56 = vpop.f32.mrf.mxu1 }
  0xbd   : > { %v380_v57 = vmin.f32 %v352_v56, 0.0  ;;  %vm371_vm14 = vcmp.gt.f32.partialorder %v352_v56, 0.0 }
  0xbf   : > { %v1564_v59 = vpop.eup %1563  ;;  %v393_v60 = vmul.f32 1.442695, %v380_v57 }
  0xc0   : > { %v1441_v62 = vadd.f32 -1.0, %v1564_v59 }
  0xc1   : > { %1565 = vpow2.f32 %v393_v60 }
  0xc2   : > { %v415_v63 = vsel %vm370_vm12, %v349_v46, %v1441_v62  ;;  %v238_v46 = vld [vmem:[%s2362_s1 + $0x30] sm:$0xff] }
  0xc3   : > { %1450 = vmatmul.msk.f32.gmra.mxu2 %vm427_vm2, %v415_v63  ;;  %291 = vmatpush.msra.mxu0 %v238_v46 }
  0xc4   : > { %v355_v1 = vpop.f32.mrf.mxu1 }
  0xc5   : > { %v381_v2 = vmin.f32 %v355_v1, 0.0  ;;  %vm372_vm15 = vcmp.gt.f32.partialorder %v355_v1, 0.0  ;;  %292 = vmatpush.msra.mxu0 %v236_v48 }
  0xc7   : > { %v1566_v4 = vpop.eup %1565  ;;  %v395_v5 = vmul.f32 1.442695, %v381_v2  ;;  %293 = vmatpush.msra.mxu0 %v234_v49 }
  0xc8   : > { %v1442_v13 = vadd.f32 -1.0, %v1566_v4 }
  0xc9   : > { %1567 = vpow2.f32 %v395_v5  ;;  %294 = vmatpush.msra.mxu0 %v232_v51 }
  0xca   : > { %v416_v14 = vsel %vm371_vm14, %v352_v56, %v1442_v13  ;;  %1419 = vmatmul.msk.f32.vlgmr.msra.gmra.mxu0 %vm244_vm1, %v1833_v6  ;;  %v1969_v56 = vld [vmem:[%s2365_s4] ss:$0 sm:$0xff] }
  0xcb   : > { %1451 = vmatmul.msk.f32.gmra.mxu2 %vm427_vm2, %v416_v14 }
  0xcc   : > { %v358_v17 = vpop.f32.mrf.mxu1 }
  0xcd   : > { %v382_v18 = vmin.f32 %v358_v17, 0.0  ;;  %vm373_vm4 = vcmp.gt.f32.partialorder %v358_v17, 0.0 }
  0xcf   : > { %v1568_v19 = vpop.eup %1567  ;;  %v397_v20 = vmul.f32 1.442695, %v382_v18 }
  0xd0   : > { %v1443_v21 = vadd.f32 -1.0, %v1568_v19 }
  0xd1   : > { %1569 = vpow2.f32 %v397_v20 }
  0xd2   : > { %v417_v22 = vsel %vm372_vm15, %v355_v1, %v1443_v21  ;;  %1420 = vmatmul.msk.f32.gmra.mxu0 %vm244_vm1, %v1838_v7 }
  0xd3   : > { %1452 = vmatmul.msk.f32.gmra.mxu2 %vm427_vm2, %v417_v22 }
  0xd4   : > { %v361_v32 = vpop.f32.mrf.mxu1 }
  0xd5   : > { %v383_v36 = vmin.f32 %v361_v32, 0.0  ;;  %vm374_vm6 = vcmp.gt.f32.partialorder %v361_v32, 0.0 }
  0xd7   : > { %v1570_v25 = vpop.eup %1569  ;;  %v399_v37 = vmul.f32 1.442695, %v383_v36 }
  0xd8   : > { %v1444_v26 = vadd.f32 -1.0, %v1570_v25 }
  0xd9   : > { %1571 = vpow2.f32 %v399_v37 }
  0xda   : > { %v418_v28 = vsel %vm373_vm4, %v358_v17, %v1444_v26  ;;  %1421 = vmatmul.msk.f32.gmra.mxu0 %vm244_vm1, %v1843_v8  ;;  %v759_v17 = vpop.xlane.xlu0 %758 }
  0xdb   : > { %1453 = vmatmul.msk.f32.gmra.mxu2 %vm427_vm2, %v418_v28  ;;  %v784_v31 = vsub.f32 1.0, %v759_v17 }
  0xdc   : > { %v364_v38 = vpop.f32.mrf.mxu1 }
  0xdd   : > { %v384_v39 = vmin.f32 %v364_v38, 0.0  ;;  %vm375_vm0 = vcmp.gt.f32.partialorder %v364_v38, 0.0 }
  0xdf   : > { %v1572_v41 = vpop.eup %1571  ;;  %v401_v42 = vmul.f32 1.442695, %v384_v39 }
  0xe0   : > { %v1445_v44 = vadd.f32 -1.0, %v1572_v41 }
  0xe1   : > { %1573 = vpow2.f32 %v401_v42 }
  0xe2   : > { %v419_v47 = vsel %vm374_vm6, %v361_v32, %v1445_v44  ;;  %1422 = vmatmul.msk.f32.gmra.mxu0 %vm244_vm1, %v1848_v9  ;;  %v762_v44 = vpop.xlane.xlu0 %761 }
  0xe3   : > { %1454 = vmatmul.msk.f32.gmra.mxu2 %vm427_vm2, %v419_v47 }
  0xe7   : > { %v1574_v50 = vpop.eup %1573 }
  0xe8   : > { %v1446_v52 = vadd.f32 -1.0, %v1574_v50 }
  0xea   : > { %v420_v53 = vsel %vm375_vm0, %v364_v38, %v1446_v52  ;;  %1423 = vmatmul.msk.f32.gmra.mxu0 %vm244_vm1, %v1853_v10  ;;  %v785_v52 = vsub.f32 1.0, %v762_v44 }
  0xeb   : > { %1455 = vmatmul.msk.f32.gmra.mxu2 %vm427_vm2, %v420_v53 }
  0xf2   : > { %1424 = vmatmul.msk.f32.gmra.mxu0 %vm244_vm1, %v1858_v11 }
  0xfa   : > { %1425 = vmatmul.msk.f32.gmra.mxu0 %vm244_vm1, %v1863_v12 }
 0x102   : > { %1426 = vmatmul.msk.f32.gmra.mxu0 %vm244_vm1, %v1874_v15 }
 0x10a   : > { %1427 = vmatmul.msk.f32.gmra.mxu0 %vm244_vm1, %v1879_v16 }
 0x12e   : > { %v472_v57 = vpop.f32.mrf.mxu2 }
 0x12f   : > { %v473_v58 = vadd.f32 %v1969_v56, %v472_v57 }
 0x131   : > { %v499_v59 = vsub.f32 0.0, %v473_v58 }
 0x133   : > { %v508_v60 = vmul.f32 1.442695, %v499_v59 }
 0x135   : > { %1575 = vpow2.f32 %v508_v60 }
 0x136   : > { %v475_v6 = vpop.f32.mrf.mxu2 }
 0x137   : > { %v476_v61 = vadd.f32 %v1969_v56, %v475_v6 }
 0x139   : > { %v500_v62 = vsub.f32 0.0, %v476_v61 }
 0x13b   : > { %v1576_v63 = vpop.eup %1575  ;;  %v510_v0 = vmul.f32 1.442695, %v500_v62 }
 0x13c   : > { %v526_v1 = vadd.f32 1.0, %v1576_v63 }
 0x13d   : > { %1577 = vpow2.f32 %v510_v0 }
 0x13e   : > { %1579 = vrcp.f32 %v526_v1  ;;  %v478_v7 = vpop.f32.mrf.mxu2  ;;  %v546_v20 = vand.u32 2147483648, %v526_v1  ;;  %v544_v22 = vand.u32 2147483647, %v526_v1  ;;  %vm540_vm8 = vweird.f32 %v526_v1 }
 0x13f   : > { %v479_v2 = vadd.f32 %v1969_v56, %v478_v7  ;;  %v765_v7 = vpop.xlane.xlu1 %764 }
 0x140   : > { %v547_v36 = vor.u32 1.1754944e-38, %v546_v20  ;;  %vm545_vm10 = vcmp.eq.f32.partialorder %v544_v22, 8.507059e+37 }
 0x141   : > { %v501_v3 = vsub.f32 0.0, %v479_v2 }
 0x143   : > { %v1578_v4 = vpop.eup %1577  ;;  %v512_v5 = vmul.f32 1.442695, %v501_v3 }
 0x144   : > { %v1580_v8 = vpop.eup %1579  ;;  %v527_v13 = vadd.f32 1.0, %v1578_v4 }
 0x145   : > { %1581 = vpow2.f32 %v512_v5  ;;  %v536_v14 = vmul.f32 %v1580_v8, %v526_v1  ;;  %vm541_vm7 = vweird.f32 %v1580_v8 }
 0x146   : > { %1583 = vrcp.f32 %v527_v13  ;;  %v481_v18 = vpop.f32.mrf.mxu2  ;;  %vm542_vm9 = vmor %vm540_vm8, %vm541_vm7  ;;  %v559_v46 = vand.u32 2147483647, %v527_v13  ;;  %v561_v47 = vand.u32 2147483648, %v527_v13  ;;  %vm555_vm12 = vweird.f32 %v527_v13 }
 0x147   : > { %v537_v19 = vsub.f32 1.0, %v536_v14  ;;  %v482_v9 = vadd.f32 %v1969_v56, %v481_v18  ;;  %v786_v14 = vsub.f32 1.0, %v765_v7 }
 0x148   : > { %v562_v59 = vor.u32 1.1754944e-38, %v561_v47  ;;  %vm560_vm14 = vcmp.eq.f32.partialorder %v559_v46, 8.507059e+37 }
 0x149   : > { %v538_v21 = vmul.f32 %v1580_v8, %v537_v19  ;;  %v502_v25 = vsub.f32 0.0, %v482_v9 }
 0x14b   : > { %v1582_v26 = vpop.eup %1581  ;;  %v539_v28 = vadd.f32 %v1580_v8, %v538_v21  ;;  %v514_v32 = vmul.f32 1.442695, %v502_v25 }
 0x14c   : > { %v1584_v35 = vpop.eup %1583  ;;  %v1983_v10 = vadd.f32 1.0, %v1582_v26 }
 0x14d   : > { %v543_v37 = vsel %vm542_vm9, %v1580_v8, %v539_v28  ;;  %1585 = vpow2.f32 %v514_v32  ;;  %v551_v38 = vmul.f32 %v1584_v35, %v527_v13  ;;  %vm556_vm11 = vweird.f32 %v1584_v35 }
 0x14e   : > { %1587 = vrcp.f32 %v1983_v10  ;;  %v548_v39 = vsel %vm545_vm10, %v547_v36, %v543_v37  ;;  %v484_v40 = vpop.f32.mrf.mxu2  ;;  %vm557_vm13 = vmor %vm555_vm12, %vm556_vm11  ;;  %v574_v2 = vand.u32 2147483647, %v1983_v10  ;;  %v576_v3 = vand.u32 2147483648, %v1983_v10 }
 0x14f   : > { %v793_v41 = vmul.f32 %v784_v31, %v548_v39  ;;  %v552_v42 = vsub.f32 1.0, %v551_v38  ;;  %v485_v43 = vadd.f32 %v1969_v56, %v484_v40  ;;  %vm570_vm4 = vweird.f32 %v1983_v10  ;;  %v768_v38 = vpop.xlane.xlu1 %767 }
 0x150   : > { %v577_v19 = vor.u32 1.1754944e-38, %v576_v3  ;;  %vm575_vm6 = vcmp.eq.f32.partialorder %v574_v2, 8.507059e+37 }
 0x151   : > { %v1989_v48 = vadd.f32 %v793_v41, %v759_v17  ;;  %v553_v49 = vmul.f32 %v1584_v35, %v552_v42  ;;  %v503_v11 = vsub.f32 0.0, %v485_v43 }
 0x153   : > { %v1586_v50 = vpop.eup %1585  ;;  %883 = vrot.lane.b32.xlu2 %v1989_v48, %s1724_s9  ;;  %856 = vrot.lane.b32.xlu1 %v1989_v48, %s1725_s10  ;;  %v554_v51 = vadd.f32 %v1584_v35, %v553_v49  ;;  %v516_v53 = vmul.f32 1.442695, %v503_v11 }
 0x154   : > { %v1588_v57 = vpop.eup %1587  ;;  %v529_v58 = vadd.f32 1.0, %v1586_v50  ;;  %829 = vrot.lane.b32.xlu0 %v1989_v48, %s1726_s11 }
 0x155   : > { %v558_v60 = vsel %vm557_vm13, %v1584_v35, %v554_v51  ;;  %v566_v6 = vmul.f32 %v1588_v57, %v1983_v10  ;;  %1589 = vpow2.f32 %v516_v53  ;;  %vm571_vm15 = vweird.f32 %v1588_v57 }
 0x156   : > { %1591 = vrcp.f32 %v529_v58  ;;  %v563_v61 = vsel %vm560_vm14, %v562_v59, %v558_v60  ;;  %v487_v62 = vpop.f32.mrf.mxu2  ;;  %vm572_vm5 = vmor %vm570_vm4, %vm571_vm15  ;;  %vm585_vm0 = vweird.f32 %v529_v58  ;;  %v591_v28 = vand.u32 2147483648, %v529_v58  ;;  %v771_v60 = vpop.xlane.xlu2 %770 }
 0x157   : > { %v794_v63 = vmul.f32 %v785_v52, %v563_v61  ;;  %v567_v0 = vsub.f32 1.0, %v566_v6  ;;  %v488_v1 = vadd.f32 %v1969_v56, %v487_v62  ;;  %v589_v35 = vand.u32 2147483647, %v529_v58 }
 0x158   : > { %v592_v39 = vor.u32 1.1754944e-38, %v591_v28 }
 0x159   : > { %v2004_v4 = vadd.f32 %v794_v63, %v762_v44  ;;  %v568_v12 = vmul.f32 %v1588_v57, %v567_v0  ;;  %v504_v5 = vsub.f32 0.0, %v488_v1  ;;  %vm590_vm9 = vcmp.eq.f32.partialorder %v589_v35, 8.507059e+37 }
 0x15a   : > { %v787_v44 = vsub.f32 1.0, %v768_v38  ;;  %v788_v0 = vsub.f32 1.0, %v771_v60 }
 0x15b   : > { %v1590_v8 = vpop.eup %1589  ;;  %885 = vrot.lane.b32.xlu2 %v2004_v4, %s1724_s9  ;;  %858 = vrot.lane.b32.xlu1 %v2004_v4, %s1725_s10  ;;  %v569_v13 = vadd.f32 %v1588_v57, %v568_v12  ;;  %v518_v17 = vmul.f32 1.442695, %v504_v5 }
 0x15c   : > { %v1592_v18 = vpop.eup %1591  ;;  %831 = vrot.lane.b32.xlu0 %v2004_v4, %s1726_s11  ;;  %v530_v9 = vadd.f32 1.0, %v1590_v8 }
 0x15d   : > { %v573_v20 = vsel %vm572_vm5, %v1588_v57, %v569_v13  ;;  %v581_v21 = vmul.f32 %v1592_v18, %v529_v58  ;;  %vm586_vm7 = vweird.f32 %v1592_v18 }
 0x15e   : > { %v578_v22 = vsel %vm575_vm6, %v577_v19, %v573_v20  ;;  %1593 = vrcp.f32 %v530_v9  ;;  %vm2017_vm8 = vmor %vm585_vm0, %vm586_vm7  ;;  %v490_v36 = vpop.f32.mrf.mxu2  ;;  %vm600_vm1 = vweird.f32 %v530_v9  ;;  %v606_v53 = vand.u32 2147483648, %v530_v9 }
 0x15f   : > { %v795_v25 = vmul.f32 %v786_v14, %v578_v22  ;;  %v582_v26 = vsub.f32 1.0, %v581_v21  ;;  %1595 = vpow2.f32 %v518_v17  ;;  %v491_v43 = vadd.f32 %v1969_v56, %v490_v36  ;;  %v774_v21 = vpop.xlane.xlu2 %773 }
 0x160   : > { %v604_v58 = vand.u32 2147483647, %v530_v9  ;;  %v607_v6 = vor.u32 1.1754944e-38, %v606_v53  ;;  %v2047_v17 = vadd.s32 64, %v1883_v23  ;;  %v957_v53 = vld [vmem:[%s2364_s3 + $0x40] sm:$0xff] }
 0x161   : > { %v2015_v31 = vadd.f32 %v795_v25, %v765_v7  ;;  %v583_v32 = vmul.f32 %v1592_v18, %v582_v26  ;;  %v505_v11 = vsub.f32 0.0, %v491_v43  ;;  %v2037_v7 = vadd.s32 56, %v1883_v23  ;;  %v961_v43 = vld [vmem:[%s2364_s3 + $0x60] sm:$0xff] }
 0x162   : > { %vm605_vm12 = vcmp.eq.f32.partialorder %v604_v58, 8.507059e+37  ;;  %vm737_vm5 = vcmp.eq.s32.totalorder %v2047_v17, %v1888_v27  ;;  %v789_v26 = vsub.f32 1.0, %v774_v21 }
 0x163   : > { %860 = vrot.lane.b32.xlu2 %v2015_v31, %s1725_s10  ;;  %833 = vrot.lane.b32.xlu1 %v2015_v31, %s1726_s11  ;;  %v584_v15 = vadd.f32 %v1592_v18, %v583_v32  ;;  %v520_v16 = vmul.f32 1.442695, %v505_v11  ;;  %vm736_vm13 = vcmp.eq.s32.totalorder %v2037_v7, %v1888_v27  ;;  %v1473_v28 = vsel %vm737_vm5, 1.0, %v1723_v30 }
 0x164   : > { %v1594_v37 = vpop.eup %1593  ;;  %v1472_v13 = vsel %vm736_vm13, 1.0, %v1723_v30  ;;  %v781_v10 = vsel %vm756_vm3, %v1473_v28, 0.0 }
 0x165   : > { %v1596_v40 = vpop.eup %1595  ;;  %v588_v41 = vsel %vm2017_vm8, %v1592_v18, %v584_v15  ;;  %v596_v42 = vmul.f32 %v1594_v37, %v530_v9  ;;  %vm601_vm10 = vweird.f32 %v1594_v37  ;;  %v778_v9 = vsel %vm756_vm3, %v1472_v13, 0.0  ;;  %v964_v15 = vld [vmem:[%s2364_s3 + $0x78] sm:$0xff] }
 0x166   : > { %v593_v46 = vsel %vm590_vm9, %v592_v39, %v588_v41  ;;  %v531_v47 = vadd.f32 1.0, %v1596_v40  ;;  %vm602_vm11 = vmor %vm600_vm1, %vm601_vm10  ;;  %965 = vmatpush.msra.mxu3 %v964_v15  ;;  %v962_v39 = vld [vmem:[%s2364_s3 + $0x68] sm:$0xff]  ;;  %v493_v13 = vpop.f32.mrf.mxu2  ;;  %vm910_vm1 = vcmask 261120   ;;  %vm920_vm10 = vcmask 523264  }
 0x167   : > { %v597_v49 = vsub.f32 1.0, %v596_v42  ;;  %v796_v50 = vmul.f32 %v787_v44, %v593_v46  ;;  %v960_v44 = vld [vmem:[%s2364_s3 + $0x58] sm:$0xff]  ;;  %v777_v11 = vpop.xlane.xlu2 %776 }
 0x168   : > { %1597 = vrcp.f32 %v531_v47  ;;  %vm615_vm14 = vweird.f32 %v531_v47  ;;  %v621_v14 = vand.u32 2147483648, %v531_v47  ;;  %v619_v19 = vand.u32 2147483647, %v531_v47 }
 0x169   : > { %v598_v51 = vmul.f32 %v1594_v37, %v597_v49  ;;  %v2032_v52 = vadd.f32 %v796_v50, %v768_v38  ;;  %1599 = vpow2.f32 %v520_v16  ;;  %v963_v38 = vld [vmem:[%s2364_s3 + $0x70] sm:$0xff] }
 0x16a   : > { %v622_v22 = vor.u32 1.1754944e-38, %v621_v14  ;;  %vm620_vm6 = vcmp.eq.f32.partialorder %v619_v19, 8.507059e+37  ;;  %966 = vmatpush.msra.mxu3 %v963_v38  ;;  %v959_v49 = vld [vmem:[%s2364_s3 + $0x50] sm:$0xff] }
 0x16b   : > { %887 = vrot.lane.b32.xlu2 %v2015_v31, %s1724_s9  ;;  %v599_v57 = vadd.f32 %v1594_v37, %v598_v51  ;;  %v958_v51 = vld [vmem:[%s2364_s3 + $0x48] sm:$0xff] }
 0x16c   : > { %967 = vmatpush.msra.mxu3 %v962_v39 }
 0x16d   : > { %v603_v61 = vsel %vm602_vm11, %v1594_v37, %v599_v57  ;;  %v790_v57 = vsub.f32 1.0, %v777_v11  ;;  %vm930_vm11 = vcmask 785408  }
 0x16e   : > { %v1598_v59 = vpop.eup %1597  ;;  %v608_v1 = vsel %vm605_vm12, %v607_v6, %v603_v61  ;;  %968 = vmatpush.msra.mxu3 %v961_v43  ;;  %v955_v6 = vld [vmem:[%s2364_s3 + $0x30] sm:$0xff]  ;;  %v954_v61 = vld [vmem:[%s2364_s3 + $0x28] sm:$0xff] }
 0x16f   : > { %v611_v62 = vmul.f32 %v1598_v59, %v531_v47  ;;  %v1600_v63 = vpop.eup %1599  ;;  %v797_v12 = vmul.f32 %v788_v0, %v608_v1  ;;  %vm616_vm15 = vweird.f32 %v1598_v59  ;;  %v952_v0 = vld [vmem:[%s2364_s3 + $0x18] sm:$0xff]  ;;  %v951_v1 = vld [vmem:[%s2364_s3 + $0x10] sm:$0xff] }
 0x170   : > { %v532_v3 = vadd.f32 1.0, %v1600_v63  ;;  %vm617_vm4 = vmor %vm615_vm14, %vm616_vm15  ;;  %969 = vmatpush.msra.mxu3 %v960_v44 }
 0x171   : > { %v612_v2 = vsub.f32 1.0, %v611_v62  ;;  %v2043_v8 = vadd.f32 %v797_v12, %v771_v60  ;;  %v953_v62 = vld [vmem:[%s2364_s3 + $0x20] sm:$0xff]  ;;  %v296_v12 = vpop.f32.mrf.mxu0 }
 0x172   : > { %1601 = vrcp.f32 %v532_v3  ;;  %vm630_vm0 = vweird.f32 %v532_v3  ;;  %v636_v42 = vand.u32 2147483648, %v532_v3  ;;  %v634_v47 = vand.u32 2147483647, %v532_v3  ;;  %970 = vmatpush.msra.mxu3 %v959_v49 }
 0x173   : > { %835 = vrot.lane.b32.xlu2 %v2032_v52, %s1726_s11  ;;  %v613_v5 = vmul.f32 %v1598_v59, %v612_v2  ;;  %v950_v2 = vld [vmem:[%s2364_s3 + $0x8] sm:$0xff]  ;;  %1603 = vtanh.f32 %v296_v12 }
 0x174   : > { %v637_v50 = vor.u32 1.1754944e-38, %v636_v42  ;;  %vm635_vm9 = vcmp.eq.f32.partialorder %v634_v47, 8.507059e+37  ;;  %971 = vmatpush.msra.mxu3 %v958_v51 }
 0x175   : > { %v614_v18 = vadd.f32 %v1598_v59, %v613_v5 }
 0x176   : > { %972 = vmatpush.msra.mxu3 %v957_v53 }
 0x177   : > { %v618_v25 = vsel %vm617_vm4, %v1598_v59, %v614_v18  ;;  %v956_v59 = vld [vmem:[%s2364_s3 + $0x38] sm:$0xff] }
 0x178   : > { %v1602_v20 = vpop.eup %1601  ;;  %v623_v35 = vsel %vm620_vm6, %v622_v22, %v618_v25  ;;  %973 = vmatpush.msra.mxu3 %v956_v59 }
 0x179   : > { %v626_v32 = vmul.f32 %v1602_v20, %v532_v3  ;;  %v798_v36 = vmul.f32 %v789_v26, %v623_v35  ;;  %vm631_vm7 = vweird.f32 %v1602_v20  ;;  %v949_v3 = vld [vmem:[%s2364_s3] sm:$0xff]  ;;  %v299_v14 = vpop.f32.mrf.mxu0 }
 0x17a   : > { %vm632_vm8 = vmor %vm630_vm0, %vm631_vm7  ;;  %974 = vmatpush.msra.mxu3 %v955_v6  ;;  %1605 = vtanh.f32 %v299_v14 }
 0x17b   : > { %862 = vrot.lane.b32.xlu2 %v2032_v52, %s1725_s10  ;;  %v627_v37 = vsub.f32 1.0, %v626_v32  ;;  %v2067_v40 = vadd.f32 %v798_v36, %v774_v21  ;;  %v1604_v21 = vpop.eup %1603  ;;  %v496_v32 = vpop.f32.mrf.mxu2 }
 0x17c   : > { %975 = vmatpush.msra.mxu3 %v954_v61  ;;  %v497_v36 = vadd.f32 %v1969_v56, %v496_v32 }
 0x17d   : > { %v628_v41 = vmul.f32 %v1602_v20, %v627_v37 }
 0x17e   : > { %976 = vmatpush.msra.mxu3 %v953_v62  ;;  %v507_v43 = vsub.f32 0.0, %v497_v36 }
 0x17f   : > { %v629_v46 = vadd.f32 %v1602_v20, %v628_v41 }
 0x180   : > { %977 = vmatpush.msra.mxu3 %v952_v0  ;;  %v1606_v41 = vpop.eup %1605  ;;  %v524_v47 = vmul.f32 1.442695, %v507_v43 }
 0x181   : > { %v633_v16 = vsel %vm632_vm8, %v1602_v20, %v629_v46  ;;  %vm1036_vm8 = vcmask 31744  }
 0x182   : > { %v638_v58 = vsel %vm635_vm9, %v637_v50, %v633_v16  ;;  %978 = vmatpush.msra.mxu3 %v951_v1 }
 0x183   : > { %837 = vrot.lane.b32.xlu2 %v2043_v8, %s1726_s11  ;;  %v799_v60 = vmul.f32 %v790_v57, %v638_v58 }
 0x184   : > { %979 = vmatpush.msra.mxu3 %v950_v2 }
 0x185   : > { %v2102_v63 = vadd.f32 %v799_v60, %v777_v11 }
 0x186   : > { %779 = vadd.xlane.f32.xlu0 %v778_v9  ;;  %980 = vmatpush.msra.mxu3 %v949_v3  ;;  %v494_v9 = vadd.f32 %v1969_v56, %v493_v13 }
 0x188   : > { %v506_v28 = vsub.f32 0.0, %v494_v9 }
 0x18a   : > { %v522_v38 = vmul.f32 1.442695, %v506_v28 }
 0x18b   : > { %864 = vrot.lane.b32.xlu2 %v2043_v8, %s1725_s10 }
 0x18d   : > { %782 = vadd.xlane.f32.xlu1 %v781_v10  ;;  %v302_v10 = vpop.f32.mrf.mxu0 }
 0x18e   : > { %1607 = vtanh.f32 %v302_v10 }
 0x18f   : > { %1609 = vpow2.f32 %v522_v38 }
 0x190   : > { %1611 = vpow2.f32 %v524_v47 }
 0x193   : > { %839 = vrot.lane.b32.xlu2 %v2067_v40, %s1726_s11 }
 0x194   : > { %v1608_v11 = vpop.eup %1607 }
 0x195   : > { %v1610_v16 = vpop.eup %1609  ;;  %v305_v38 = vpop.f32.mrf.mxu0 }
 0x196   : > { %v533_v57 = vadd.f32 1.0, %v1610_v16  ;;  %v1612_v58 = vpop.eup %1611 }
 0x197   : > { %v534_v59 = vadd.f32 1.0, %v1612_v58 }
 0x198   : > { %1613 = vrcp.f32 %v533_v57  ;;  %vm645_vm12 = vweird.f32 %v533_v57  ;;  %v651_v3 = vand.u32 2147483648, %v533_v57  ;;  %v649_v13 = vand.u32 2147483647, %v533_v57 }
 0x199   : > { %1615 = vrcp.f32 %v534_v59  ;;  %vm660_vm4 = vweird.f32 %v534_v59 }
 0x19a   : > { %889 = vrot.lane.b32.xlu0 %v2032_v52, %s1724_s9  ;;  %v652_v14 = vor.u32 1.1754944e-38, %v651_v3  ;;  %vm650_vm15 = vcmp.eq.f32.partialorder %v649_v13, 8.507059e+37  ;;  %1617 = vtanh.f32 %v305_v38 }
 0x19b   : > { %893 = vrot.lane.b32.xlu2 %v2067_v40, %s1724_s9 }
 0x19d   : > { %v308_v47 = vpop.f32.mrf.mxu0 }
 0x19e   : > { %v1614_v60 = vpop.eup %1613  ;;  %1619 = vtanh.f32 %v308_v47 }
 0x19f   : > { %v641_v6 = vmul.f32 %v1614_v60, %v533_v57  ;;  %v1616_v62 = vpop.eup %1615  ;;  %vm646_vm13 = vweird.f32 %v1614_v60 }
 0x1a0   : > { %vm647_vm14 = vmor %vm645_vm12, %vm646_vm13  ;;  %vm661_vm5 = vweird.f32 %v1616_v62  ;;  %v1618_v43 = vpop.eup %1617 }
 0x1a1   : > { %v642_v0 = vsub.f32 1.0, %v641_v6  ;;  %vm662_vm6 = vmor %vm660_vm4, %vm661_vm5 }
 0x1a2   : > { %866 = vrot.lane.b32.xlu0 %v2067_v40, %s1725_s10 }
 0x1a3   : > { %868 = vrot.lane.b32.xlu2 %v2102_v63, %s1725_s10  ;;  %v643_v1 = vmul.f32 %v1614_v60, %v642_v0 }
 0x1a5   : > { %v311_v16 = vpop.f32.mrf.mxu0 }
 0x1a6   : > { %891 = vrot.lane.b32.xlu1 %v2043_v8, %s1724_s9  ;;  %1621 = vtanh.f32 %v311_v16 }
 0x1aa   : > { %841 = vrot.lane.b32.xlu0 %v2102_v63, %s1726_s11 }
 0x1ad   : > { %v884_v5 = vpop.permute.xlu2 %883  ;;  %v314_v0 = vpop.f32.mrf.mxu0 }
 0x1ae   : > { %1623 = vtanh.f32 %v314_v0 }
 0x1b2   : > { %895 = vrot.lane.b32.xlu0 %v2102_v63, %s1724_s9 }
 0x1b5   : > { %v886_v18 = vpop.permute.xlu2 %885 }
 0x1bd   : > { %v861_v15 = vpop.permute.xlu2 %860 }
 0x1c5   : > { %v857_v19 = vpop.permute.xlu1 %856  ;;  %v888_v50 = vpop.permute.xlu2 %887 }
 0x1c6   : > { %v830_v20 = vpop.permute.xlu0 %829 }
 0x1c7   : > { %v911_v22 = vsel %vm910_vm1, %v1989_v48, %v830_v20 }
 0x1c8   : > { %v921_v25 = vsel %vm920_vm10, %v911_v22, %v857_v19 }
 0x1c9   : > { %v931_v26 = vsel %vm930_vm11, %v921_v25, %v884_v5  ;;  %v644_v5 = vadd.f32 %v1614_v60, %v643_v1 }
 0x1ca   : > { %v940_v35 = vmul.f32 %v1604_v21, %v931_v26  ;;  %v666_v21 = vand.u32 2147483648, %v534_v59  ;;  %v664_v26 = vand.u32 2147483647, %v534_v59 }
 0x1cb   : > { %v648_v19 = vsel %vm647_vm14, %v1614_v60, %v644_v5 }
 0x1cc   : > { %981 = vmatmul.f32.vlgmr.msra.gmra.mxu3 %v940_v35  ;;  %v653_v22 = vsel %vm650_vm15, %v652_v14, %v648_v19  ;;  %v667_v10 = vor.u32 1.1754944e-38, %v666_v21  ;;  %vm665_vm0 = vcmp.eq.f32.partialorder %v664_v26, 8.507059e+37 }
 0x1cd   : > { %v859_v37 = vpop.permute.xlu1 %858  ;;  %v836_v61 = vpop.permute.xlu2 %835 }
 0x1ce   : > { %v832_v39 = vpop.permute.xlu0 %831 }
 0x1cf   : > { %v912_v48 = vsel %vm910_vm1, %v2004_v4, %v832_v39 }
 0x1d0   : > { %v922_v42 = vsel %vm920_vm10, %v912_v48, %v859_v37 }
 0x1d1   : > { %v932_v44 = vsel %vm930_vm11, %v922_v42, %v886_v18 }
 0x1d2   : > { %v941_v46 = vmul.f32 %v1606_v41, %v932_v44  ;;  %v914_v44 = vsel %vm910_vm1, %v2032_v52, %v836_v61 }
 0x1d4   : > { %984 = vmatmul.f32.gmra.mxu3 %v941_v46 }
 0x1d5   : > { %v834_v49 = vpop.permute.xlu1 %833  ;;  %v863_v2 = vpop.permute.xlu2 %862 }
 0x1d6   : > { %v913_v56 = vsel %vm910_vm1, %v2015_v31, %v834_v49  ;;  %v656_v31 = vmul.f32 %v1616_v62, %v534_v59  ;;  %v924_v46 = vsel %vm920_vm10, %v914_v44, %v863_v2 }
 0x1d7   : > { %v923_v51 = vsel %vm920_vm10, %v913_v56, %v861_v15 }
 0x1d8   : > { %v933_v4 = vsel %vm930_vm11, %v923_v51, %v888_v50  ;;  %v657_v12 = vsub.f32 1.0, %v656_v31 }
 0x1d9   : > { %v942_v53 = vmul.f32 %v1608_v11, %v933_v4  ;;  %v1620_v4 = vpop.eup %1619 }
 0x1da   : > { %v658_v18 = vmul.f32 %v1616_v62, %v657_v12  ;;  %v1622_v31 = vpop.eup %1621 }
 0x1db   : > { %v1624_v13 = vpop.eup %1623 }
 0x1dc   : > { %987 = vmatmul.f32.gmra.mxu3 %v942_v53  ;;  %v659_v25 = vadd.f32 %v1616_v62, %v658_v18 }
 0x1dd   : > { %v838_v32 = vpop.permute.xlu2 %837 }
 0x1de   : > { %v663_v15 = vsel %vm662_vm6, %v1616_v62, %v659_v25  ;;  %v915_v53 = vsel %vm910_vm1, %v2043_v8, %v838_v32 }
 0x1df   : > { %v668_v39 = vsel %vm665_vm0, %v667_v10, %v663_v15  ;;  %v317_v15 = vpop.f32.mrf.mxu0  ;;  %vm1112_vm0 = vcmask 588800  }
 0x1e0   : > { %1625 = vtanh.f32 %v317_v15 }
 0x1e5   : > { %v865_v42 = vpop.permute.xlu2 %864 }
 0x1e6   : > { %v925_v57 = vsel %vm920_vm10, %v915_v53, %v865_v42 }
 0x1ed   : > { %v840_v50 = vpop.permute.xlu2 %839 }
 0x1ee   : > { %v916_v6 = vsel %vm910_vm1, %v2067_v40, %v840_v50 }
 0x1f5   : > { %v894_v52 = vpop.permute.xlu2 %893 }
 0x1f9   : > { %v780_v9 = vpop.xlane.xlu0 %779 }
 0x1fa   : > { %v791_v20 = vsub.f32 1.0, %v780_v9 }
 0x1fc   : > { %v800_v28 = vmul.f32 %v791_v20, %v653_v22 }
 0x1fd   : > { %v869_v3 = vpop.permute.xlu2 %868 }
 0x1fe   : > { %v2140_v35 = vadd.f32 %v800_v28, %v780_v9 }
 0x200   : > { %897 = vrot.lane.b32.xlu0 %v2140_v35, %s1724_s9  ;;  %870 = vrot.lane.b32.xlu2 %v2140_v35, %s1725_s10  ;;  %v783_v36 = vpop.xlane.xlu1 %782 }
 0x201   : > { %843 = vrot.lane.b32.xlu1 %v2140_v35, %s1726_s11  ;;  %v792_v37 = vsub.f32 1.0, %v783_v36 }
 0x203   : > { %v801_v41 = vmul.f32 %v792_v37, %v668_v39  ;;  %v320_v37 = vpop.f32.mrf.mxu0 }
 0x204   : > { %1627 = vtanh.f32 %v320_v37 }
 0x205   : > { %v2148_v48 = vadd.f32 %v801_v41, %v783_v36  ;;  %v1626_v41 = vpop.eup %1625 }
 0x208   : > { %899 = vrot.lane.b32.xlu0 %v2148_v48, %s1724_s9  ;;  %872 = vrot.lane.b32.xlu2 %v2148_v48, %s1725_s10  ;;  %s1727_s10 = smov 112  }
 0x209   : > { %845 = vrot.lane.b32.xlu1 %v2148_v48, %s1726_s11 }
 0x20c   : > { %v890_v49 = vpop.permute.xlu0 %889 }
 0x20d   : > { %v934_v11 = vsel %vm930_vm11, %v924_v46, %v890_v49  ;;  %v1628_v49 = vpop.eup %1627 }
 0x20e   : > { %v943_v56 = vmul.f32 %v1618_v43, %v934_v11 }
 0x210   : > { %990 = vmatmul.f32.gmra.mxu3 %v943_v56 }
 0x214   : > { %v867_v51 = vpop.permute.xlu0 %866 }
 0x215   : > { %v926_v61 = vsel %vm920_vm10, %v916_v6, %v867_v51 }
 0x216   : > { %v936_v1 = vsel %vm930_vm11, %v926_v61, %v894_v52 }
 0x217   : > { %v945_v8 = vmul.f32 %v1622_v31, %v936_v1 }
 0x218   : > { %v892_v58 = vpop.permute.xlu1 %891 }
 0x219   : > { %v935_v59 = vsel %vm930_vm11, %v925_v57, %v892_v58 }
 0x21a   : > { %v944_v60 = vmul.f32 %v1620_v4, %v935_v59 }
 0x21c   : > { %v842_v62 = vpop.permute.xlu0 %841  ;;  %993 = vmatmul.f32.gmra.mxu3 %v944_v60 }
 0x21d   : > { %v917_v2 = vsel %vm910_vm1, %v2102_v63, %v842_v62 }
 0x21e   : > { %v927_v5 = vsel %vm920_vm10, %v917_v2, %v869_v3 }
 0x224   : > { %v896_v12 = vpop.permute.xlu0 %895  ;;  %996 = vmatmul.f32.gmra.mxu3 %v945_v8 }
 0x225   : > { %v937_v40 = vsel %vm930_vm11, %v927_v5, %v896_v12 }
 0x226   : > { %v946_v14 = vmul.f32 %v1624_v13, %v937_v40 }
 0x22c   : > { %999 = vmatmul.f32.gmra.mxu3 %v946_v14 }
 0x24f   : > { %v982_v18 = vpop.f32.mrf.mxu3 }
 0x250   : > { %vm1009_vm7 = vcmp.gt.f32.partialorder %v982_v18, 0.0  ;;  %v1018_v19 = vmul.f32 0.2, %v982_v18 }
 0x252   : > { %v2172_v9 = vsel %vm1009_vm7, %v982_v18, %v1018_v19  ;;  %vm683_vm7 = vcmp.ge.s32.totalorder %v1883_v23, %v1888_v27 }
 0x253   : > { %v1037_v20 = vsel %vm1036_vm8, %v2172_v9, -inf }
 0x254   : > { %1038 = vmax.xlane.f32.xlu1 %v1037_v20 }
 0x257   : > { %v985_v63 = vpop.f32.mrf.mxu3 }
 0x258   : > { %vm1010_vm9 = vcmp.gt.f32.partialorder %v985_v63, 0.0  ;;  %v1019_v21 = vmul.f32 0.2, %v985_v63 }
 0x25a   : > { %v2176_v22 = vsel %vm1010_vm9, %v985_v63, %v1019_v21  ;;  %v871_v36 = vpop.permute.xlu2 %870 }
 0x25b   : > { %v1040_v25 = vsel %vm1036_vm8, %v2176_v22, -inf }
 0x25c   : > { %1041 = vmax.xlane.f32.xlu0 %v1040_v25 }
 0x25f   : > { %v988_v26 = vpop.f32.mrf.mxu3 }
 0x260   : > { %vm1011_vm12 = vcmp.gt.f32.partialorder %v988_v26, 0.0  ;;  %v1020_v28 = vmul.f32 0.2, %v988_v26 }
 0x262   : > { %v2180_v32 = vsel %vm1011_vm12, %v988_v26, %v1020_v28  ;;  %v873_v11 = vpop.permute.xlu2 %872  ;;  %vm687_vm12 = vcmp.ge.s32.totalorder %v1919_v54, %v1888_v27 }
 0x263   : > { %v1043_v10 = vsel %vm1036_vm8, %v2180_v32, -inf }
 0x264   : > { %1044 = vmax.xlane.f32.xlu1 %v1043_v10 }
 0x272   : > { %v898_v38 = vpop.permute.xlu0 %897 }
 0x273   : > { %v844_v39 = vpop.permute.xlu1 %843 }
 0x274   : > { %v918_v42 = vsel %vm910_vm1, %v2140_v35, %v844_v39 }
 0x275   : > { %v928_v43 = vsel %vm920_vm10, %v918_v42, %v871_v36 }
 0x276   : > { %v938_v44 = vsel %vm930_vm11, %v928_v43, %v898_v38 }
 0x277   : > { %v947_v46 = vmul.f32 %v1626_v41, %v938_v44 }
 0x279   : > { %1002 = vmatmul.f32.gmra.mxu3 %v947_v46 }
 0x27a   : > { %v900_v50 = vpop.permute.xlu0 %899 }
 0x27b   : > { %v846_v47 = vpop.permute.xlu1 %845 }
 0x27c   : > { %v919_v56 = vsel %vm910_vm1, %v2148_v48, %v846_v47 }
 0x27d   : > { %v929_v51 = vsel %vm920_vm10, %v919_v56, %v873_v11 }
 0x27e   : > { %v939_v16 = vsel %vm930_vm11, %v929_v51, %v900_v50 }
 0x27f   : > { %v948_v4 = vmul.f32 %v1628_v49, %v939_v16 }
 0x281   : > { %1005 = vmatmul.f32.gmra.mxu3 %v948_v4 }
 0x293   : > { %v991_v35 = vpop.f32.mrf.mxu3 }
 0x294   : > { %vm1012_vm13 = vcmp.gt.f32.partialorder %v991_v35, 0.0  ;;  %v1021_v53 = vmul.f32 0.2, %v991_v35 }
 0x296   : > { %v2192_v57 = vsel %vm1012_vm13, %v991_v35, %v1021_v53 }
 0x297   : > { %v1046_v58 = vsel %vm1036_vm8, %v2192_v57, -inf }
 0x298   : > { %1047 = vmax.xlane.f32.xlu2 %v1046_v58 }
 0x29f   : > { %v994_v52 = vpop.f32.mrf.mxu3 }
 0x2a0   : > { %vm1013_vm14 = vcmp.gt.f32.partialorder %v994_v52, 0.0  ;;  %v1022_v59 = vmul.f32 0.2, %v994_v52 }
 0x2a2   : > { %v2196_v48 = vsel %vm1013_vm14, %v994_v52, %v1022_v59 }
 0x2a3   : > { %v1049_v60 = vsel %vm1036_vm8, %v2196_v48, -inf }
 0x2a4   : > { %1050 = vmax.xlane.f32.xlu2 %v1049_v60 }
 0x2a7   : > { %v997_v6 = vpop.f32.mrf.mxu3 }
 0x2a8   : > { %vm1014_vm1 = vcmp.gt.f32.partialorder %v997_v6, 0.0  ;;  %v1023_v61 = vmul.f32 0.2, %v997_v6 }
 0x2aa   : > { %v1032_v62 = vsel %vm1014_vm1, %v997_v6, %v1023_v61 }
 0x2ab   : > { %v1052_v0 = vsel %vm1036_vm8, %v1032_v62, -inf }
 0x2ac   : > { %1053 = vmax.xlane.f32.xlu0 %v1052_v0 }
 0x2af   : > { %v1000_v31 = vpop.f32.mrf.mxu3 }
 0x2b0   : > { %vm1015_vm10 = vcmp.gt.f32.partialorder %v1000_v31, 0.0  ;;  %v1024_v1 = vmul.f32 0.2, %v1000_v31 }
 0x2b2   : > { %v1033_v8 = vsel %vm1015_vm10, %v1000_v31, %v1024_v1 }
 0x2b3   : > { %v1055_v2 = vsel %vm1036_vm8, %v1033_v8, -inf }
 0x2b4   : > { %1056 = vmax.xlane.f32.xlu1 %v1055_v2 }
 0x2c7   : > { %v1039_v63 = vpop.xlane.xlu1 %1038 }
 0x2cf   : > { %v1042_v21 = vpop.xlane.xlu0 %1041 }
 0x2d7   : > { %v1045_v26 = vpop.xlane.xlu1 %1044 }
 0x2fc   : > { %v1003_v3 = vpop.f32.mrf.mxu3 }
 0x2fd   : > { %vm1016_vm11 = vcmp.gt.f32.partialorder %v1003_v3, 0.0  ;;  %v1025_v12 = vmul.f32 0.2, %v1003_v3 }
 0x2ff   : > { %v1034_v5 = vsel %vm1016_vm11, %v1003_v3, %v1025_v12 }
 0x300   : > { %v1058_v13 = vsel %vm1036_vm8, %v1034_v5, -inf }
 0x301   : > { %1059 = vmax.xlane.f32.xlu2 %v1058_v13 }
 0x304   : > { %v1006_v40 = vpop.f32.mrf.mxu3 }
 0x305   : > { %vm1017_vm15 = vcmp.gt.f32.partialorder %v1006_v40, 0.0  ;;  %v1026_v14 = vmul.f32 0.2, %v1006_v40 }
 0x307   : > { %v1035_v18 = vsel %vm1017_vm15, %v1006_v40, %v1026_v14 }
 0x308   : > { %v1061_v19 = vsel %vm1036_vm8, %v1035_v18, -inf }
 0x309   : > { %1062 = vmax.xlane.f32.xlu0 %v1061_v19 }
 0x30b   : > { %v1048_v20 = vpop.xlane.xlu2 %1047 }
 0x317   : > { %v1051_v25 = vpop.xlane.xlu2 %1050 }
 0x318   : > { %v1064_v36 = vmax.f32 %v1039_v63, %v1051_v25  ;;  %v692_v63 = vadd.s32 9, %v1888_v27 }
 0x31a   : > { %vm693_vm9 = vcmp.lt.s32.totalorder %v1883_v23, %v692_v63  ;;  %vm697_vm13 = vcmp.lt.s32.totalorder %v1919_v54, %v692_v63 }
 0x31b   : > { %vm702_vm1 = vmand %vm683_vm7, %vm693_vm9  ;;  %vm688_vm7 = vcmp.ge.s32.totalorder %v1922_v55, %v1888_v27  ;;  %vm698_vm9 = vcmp.lt.s32.totalorder %v1922_v55, %v692_v63 }
 0x31c   : > { %vm706_vm10 = vmand %vm687_vm12, %vm697_vm13 }
 0x31d   : > { %vm707_vm13 = vmand %vm688_vm7, %vm698_vm9  ;;  %vm690_vm7 = vcmp.ge.s32.totalorder %v2037_v7, %v1888_v27  ;;  %vm700_vm9 = vcmp.lt.s32.totalorder %v2037_v7, %v692_v63 }
 0x31f   : > { %v1054_v28 = vpop.xlane.xlu0 %1053 }
 0x320   : > { %v1065_v39 = vmax.f32 %v1042_v21, %v1054_v28 }
 0x327   : > { %v1057_v15 = vpop.xlane.xlu1 %1056 }
 0x328   : > { %v1066_v41 = vmax.f32 %v1045_v26, %v1057_v15 }
 0x374   : > { %v1060_v10 = vpop.xlane.xlu2 %1059 }
 0x375   : > { %v1067_v37 = vmax.f32 %v1048_v20, %v1060_v10 }
 0x377   : > { %v1070_v43 = vmax.f32 %v1066_v41, %v1067_v37 }
 0x37c   : > { %v1063_v38 = vpop.xlane.xlu0 %1062 }
 0x37d   : > { %v1068_v42 = vmax.f32 %v1064_v36, %v1063_v38 }
 0x37f   : > { %v1069_v44 = vmax.f32 %v1068_v42, %v1065_v39  ;;  %v1460_v39 = vsel %vm706_vm10, 1.0, %v1723_v30  ;;  %v1461_v42 = vsel %vm707_vm13, 1.0, %v1723_v30  ;;  %vm689_vm10 = vcmp.ge.s32.totalorder %v1937_v29, %v1888_v27  ;;  %vm709_vm13 = vmand %vm690_vm7, %vm700_vm9 }
 0x381   : > { %v1071_v46 = vmax.f32 %v1069_v44, %v1070_v43 }
 0x383   : > { %v1072_v47 = vrot.slane %v1071_v46, 4 }
 0x385   : > { %v1073_v49 = vmax.f32 %v1071_v46, %v1072_v47 }
 0x387   : > { %v1074_v11 = vrot.slane %v1073_v49, 2 }
 0x389   : > { %v1075_v56 = vmax.f32 %v1073_v49, %v1074_v11 }
 0x38b   : > { %v1076_v50 = vrot.slane %v1075_v56, 1 }
 0x38d   : > { %v1077_v51 = vmax.f32 %v1075_v56, %v1076_v50 }
 0x38f   : > { %v1086_v16 = vsub.f32 %v1035_v18, %v1077_v51  ;;  %v1085_v4 = vsub.f32 %v1034_v5, %v1077_v51  ;;  %v1084_v35 = vsub.f32 %v1033_v8, %v1077_v51  ;;  %v1083_v52 = vsub.f32 %v1032_v62, %v1077_v51 }
 0x390   : > { %v1082_v60 = vsub.f32 %v2196_v48, %v1077_v51  ;;  %v1081_v61 = vsub.f32 %v2192_v57, %v1077_v51  ;;  %v1080_v31 = vsub.f32 %v2180_v32, %v1077_v51  ;;  %v1079_v8 = vsub.f32 %v2176_v22, %v1077_v51 }
 0x391   : > { %v1103_v53 = vmul.f32 1.442695, %v1086_v16  ;;  %v1101_v58 = vmul.f32 1.442695, %v1085_v4  ;;  %v1099_v59 = vmul.f32 1.442695, %v1084_v35  ;;  %v1078_v57 = vsub.f32 %v2172_v9, %v1077_v51 }
 0x392   : > { %v1097_v6 = vmul.f32 1.442695, %v1083_v52  ;;  %v1095_v0 = vmul.f32 1.442695, %v1082_v60  ;;  %v1093_v2 = vmul.f32 1.442695, %v1081_v61 }
 0x393   : > { %1629 = vpow2.f32 %v1103_v53  ;;  %v1105_v62 = vmul.u32 9, %v1883_v23  ;;  %v1091_v48 = vmul.f32 1.442695, %v1080_v31  ;;  %v1089_v32 = vmul.f32 1.442695, %v1079_v8 }
 0x394   : > { %1631 = vpow2.f32 %v1101_v58  ;;  %v1087_v13 = vmul.f32 1.442695, %v1078_v57  ;;  %v1456_v23 = vsel %vm702_vm1, 1.0, %v1723_v30  ;;  %vm695_vm1 = vcmp.lt.s32.totalorder %v1899_v34, %v692_v63 }
 0x395   : > { %1633 = vpow2.f32 %v1099_v59  ;;  %v1107_v5 = vadd.s32 9, %v1105_v62  ;;  %vm1106_vm4 = vcmp.ge.s32.totalorder %v1885_v24, %v1105_v62 }
 0x396   : > { %1635 = vpow2.f32 %v1097_v6 }
 0x397   : > { %1637 = vpow2.f32 %v1095_v0  ;;  %vm1108_vm5 = vcmp.lt.s32.totalorder %v1885_v24, %v1107_v5  ;;  %v1650_v5 = vld [vmem:[%s1827_s25 + $0x30] sm:$0xff] }
 0x398   : > { %1639 = vpow2.f32 %v1093_v2  ;;  %vm1109_vm6 = vmand %vm1106_vm4, %vm1108_vm5  ;;  %vm684_vm5 = vcmp.ge.s32.totalorder %v1896_v33, %v1888_v27 }
 0x399   : > { %v2207_v1 = vpop.eup %1629  ;;  %1641 = vpow2.f32 %v1091_v48  ;;  %v2237_v19 = vsel %vm1109_vm6, 1.0, %v1723_v30  ;;  %vm694_vm6 = vcmp.lt.s32.totalorder %v1896_v33, %v692_v63 }
 0x39a   : > { %1123 = vmatpush.msrb.mxu1 %v2207_v1  ;;  %v2212_v3 = vpop.eup %1631  ;;  %1643 = vpow2.f32 %v1089_v32  ;;  %vm703_vm12 = vmand %vm684_vm5, %vm694_vm6  ;;  %vm686_vm5 = vcmp.ge.s32.totalorder %v1911_v45, %v1888_v27  ;;  %vm696_vm6 = vcmp.lt.s32.totalorder %v1911_v45, %v692_v63 }
 0x39b   : > { %v2216_v12 = vpop.eup %1633  ;;  %1645 = vpow2.f32 %v1087_v13  ;;  %v1457_v54 = vsel %vm703_vm12, 1.0, %v1723_v30  ;;  %vm705_vm12 = vmand %vm686_vm5, %vm696_vm6 }
 0x39c   : > { %1124 = vmatpush.msrb.mxu1 %v2212_v3  ;;  %v2219_v22 = vpop.eup %1635 }
 0x39d   : > { %v2222_v40 = vpop.eup %1637 }
 0x39e   : > { %1125 = vmatpush.msrb.mxu1 %v2216_v12  ;;  %v2227_v9 = vpop.eup %1639 }
 0x39f   : > { %v2230_v14 = vpop.eup %1641 }
 0x3a0   : > { %1126 = vmatpush.msrb.mxu1 %v2219_v22  ;;  %v2233_v18 = vpop.eup %1643 }
 0x3a1   : > { %v2239_v20 = vpop.eup %1645 }
 0x3a2   : > { %1127 = vmatpush.msrb.mxu1 %v2222_v40 }
 0x3a4   : > { %1128 = vmatpush.msrb.mxu1 %v2227_v9 }
 0x3a6   : > { %1129 = vmatpush.msrb.mxu1 %v2230_v14 }
 0x3a8   : > { %1130 = vmatpush.msrb.mxu1 %v2233_v18 }
 0x3aa   : > { %1131 = vmatpush.msrb.mxu1 %v2239_v20 }
 0x3ab   : > { %1475 = vmatmul.msk.f32.vlgmr.msrb.gmra.mxu1 %vm1112_vm0, %v2237_v19 }
 0x428   : > { %v1133_v24 = vpop.f32.mrf.mxu1 }
 0x429   : > { %1647 = vrcp.f32 %v1133_v24  ;;  %v1147_v28 = vand.u32 2147483648, %v1133_v24  ;;  %v1145_v15 = vand.u32 2147483647, %v1133_v24  ;;  %vm1141_vm11 = vweird.f32 %v1133_v24 }
 0x42b   : > { %v1148_v37 = vor.u32 1.1754944e-38, %v1147_v28  ;;  %vm1146_vm4 = vcmp.eq.f32.partialorder %v1145_v15, 8.507059e+37  ;;  %v1653_v28 = vld [vmem:[%s2365_s4] ss:$0 sm:$0xff] }
 0x42f   : > { %v1648_v21 = vpop.eup %1647 }
 0x430   : > { %v1137_v25 = vmul.f32 %v1648_v21, %v1133_v24  ;;  %vm1142_vm14 = vweird.f32 %v1648_v21 }
 0x431   : > { %vm1143_vm15 = vmor %vm1141_vm11, %vm1142_vm14  ;;  %vm685_vm14 = vcmp.ge.s32.totalorder %v1899_v34, %v1888_v27  ;;  %vm699_vm11 = vcmp.lt.s32.totalorder %v1937_v29, %v692_v63  ;;  %v1459_v34 = vsel %vm705_vm12, 1.0, %v1723_v30  ;;  %v1463_v29 = vsel %vm709_vm13, 1.0, %v1723_v30 }
 0x432   : > { %v1138_v26 = vsub.f32 1.0, %v1137_v25 }
 0x434   : > { %v1139_v10 = vmul.f32 %v1648_v21, %v1138_v26 }
 0x436   : > { %v1140_v36 = vadd.f32 %v1648_v21, %v1139_v10 }
 0x438   : > { %v1144_v38 = vsel %vm1143_vm15, %v1648_v21, %v1140_v36  ;;  %vm704_vm15 = vmand %vm685_vm14, %vm695_vm1  ;;  %vm691_vm14 = vcmp.ge.s32.totalorder %v2047_v17, %v1888_v27  ;;  %vm701_vm1 = vcmp.lt.s32.totalorder %v2047_v17, %v692_v63  ;;  %v1652_v63 = vld [vmem:[%s1827_s25 + $0x18] sm:$0xff] }
 0x439   : > { %v1149_v41 = vsel %vm1146_vm4, %v1148_v37, %v1144_v38  ;;  %vm708_vm4 = vmand %vm689_vm10, %vm699_vm11  ;;  %v1458_v33 = vsel %vm704_vm15, 1.0, %v1723_v30  ;;  %v1654_v38 = vld [vmem:[%s1827_s25 + $0x38] sm:$0xff] }
 0x43a   : > { %1192 = vmatpush.msrb.mxu0 %v1149_v41  ;;  %1490 = vmatpush.msrb.mxu2 %v1149_v41  ;;  %v1462_v55 = vsel %vm708_vm4, 1.0, %v1723_v30  ;;  %vm710_vm10 = vmand %vm691_vm14, %vm701_vm1 }
 0x43b   : > { %1476 = vmatmul.msk.f32.vlgmr.msrb.gmra.mxu0 %vm756_vm3, %v1456_v23  ;;  %1480 = vmatmul.msk.f32.vlgmr.msrb.gmra.mxu2 %vm756_vm3, %v1460_v39  ;;  %v1464_v45 = vsel %vm710_vm10, 1.0, %v1723_v30  ;;  %v1655_v39 = vld [vmem:[%s1827_s25 + $0x40] sm:$0xff] }
 0x443   : > { %1477 = vmatmul.msk.f32.gmra.mxu0 %vm756_vm3, %v1457_v54  ;;  %1481 = vmatmul.msk.f32.gmra.mxu2 %vm756_vm3, %v1461_v42  ;;  %v1656_v42 = vld [vmem:[%s1827_s25] sm:$0xff] }
 0x44b   : > { %1478 = vmatmul.msk.f32.gmra.mxu0 %vm756_vm3, %v1458_v33  ;;  %1482 = vmatmul.msk.f32.gmra.mxu2 %vm756_vm3, %v1462_v55 }
 0x453   : > { %1479 = vmatmul.msk.f32.gmra.mxu0 %vm756_vm3, %v1459_v34  ;;  %1483 = vmatmul.msk.f32.gmra.mxu2 %vm756_vm3, %v1463_v29 }
 0x45b   : > { %1484 = vmatmul.msk.f32.gmra.mxu2 %vm756_vm3, %v1464_v45 }
 0x4b8   : > { %v1194_v7 = vpop.f32.mrf.mxu0 }
 0x4b9   : > { %v1221_v59 = vmul.f32 %v2239_v20, %v1194_v7  ;;  %v1651_v20 = vld [vmem:[%s1827_s25 + $0x20] sm:$0xff]  ;;  %v1657_v7 = vld [vmem:[%s1827_s25 + $0x8] sm:$0xff] }
 0x4bb   : > { %v1230_v31 = vsel %vm1036_vm8, %v1221_v59, 0.0 }
 0x4be   : > { %v1206_v43 = vpop.f32.mrf.mxu2 }
 0x4bf   : > { %v1225_v44 = vmul.f32 %v2222_v40, %v1206_v43 }
 0x4c0   : > { %v1197_v46 = vpop.f32.mrf.mxu0 }
 0x4c1   : > { %v1242_v47 = vsel %vm1036_vm8, %v1225_v44, 0.0  ;;  %v1222_v52 = vmul.f32 %v2233_v18, %v1197_v46  ;;  %v1658_v44 = vld [vmem:[%s1827_s25 + $0x10] sm:$0xff] }
 0x4c2   : > { %1243 = vadd.xlane.f32.xlu2 %v1242_v47 }
 0x4c3   : > { %v1233_v0 = vsel %vm1036_vm8, %v1222_v52, 0.0 }
 0x4c6   : > { %v1209_v27 = vpop.f32.mrf.mxu2 }
 0x4c7   : > { %v1226_v17 = vmul.f32 %v2219_v22, %v1209_v27 }
 0x4c8   : > { %v1200_v49 = vpop.f32.mrf.mxu0 }
 0x4c9   : > { %v1245_v11 = vsel %vm1036_vm8, %v1226_v17, 0.0  ;;  %v1223_v2 = vmul.f32 %v2230_v14, %v1200_v49 }
 0x4ca   : > { %1246 = vadd.xlane.f32.xlu1 %v1245_v11 }
 0x4cb   : > { %v1236_v8 = vsel %vm1036_vm8, %v1223_v2, 0.0 }
 0x4ce   : > { %v1212_v56 = vpop.f32.mrf.mxu2 }
 0x4cf   : > { %v1227_v30 = vmul.f32 %v2216_v12, %v1212_v56  ;;  %v1649_v12 = vld [vmem:[%s1827_s25 + $0x28] sm:$0xff]  ;;  %s215_s25 = sand.u32 1, %s1713_s19  }
 0x4d0   : > { %v1203_v51 = vpop.f32.mrf.mxu0  ;;  %s1338_s16 = scalar_lea.sflag [#allocation3], %s215_s25 }
 0x4d1   : > { %v1248_v50 = vsel %vm1036_vm8, %v1227_v30, 0.0  ;;  %v1224_v16 = vmul.f32 %v2227_v9, %v1203_v51 }
 0x4d2   : > { %1249 = vadd.xlane.f32.xlu0 %v1248_v50 }
 0x4d3   : > { %v1239_v58 = vsel %vm1036_vm8, %v1224_v16, 0.0 }
 0x4d6   : > { %v1215_v4 = vpop.f32.mrf.mxu2 }
 0x4d7   : > { %v1228_v35 = vmul.f32 %v2212_v3, %v1215_v4 }
 0x4d9   : > { %v1251_v53 = vsel %vm1036_vm8, %v1228_v35, 0.0 }
 0x4da   : > { %1252 = vadd.xlane.f32.xlu2 %v1251_v53  ;;  %1240 = vadd.xlane.f32.xlu0 %v1239_v58 }
 0x4de   : > { %v1218_v60 = vpop.f32.mrf.mxu2 }
 0x4df   : > { %v1229_v6 = vmul.f32 %v2207_v1, %v1218_v60 }
 0x4e1   : > { %v1254_v61 = vsel %vm1036_vm8, %v1229_v6, 0.0 }
 0x4e2   : > { %1255 = vadd.xlane.f32.xlu1 %v1254_v61  ;;  %1234 = vadd.xlane.f32.xlu2 %v1233_v0 }
 0x4e3   : > { %1231 = vadd.xlane.f32.xlu0 %v1230_v31 }
 0x4ea   : > { %1237 = vadd.xlane.f32.xlu1 %v1236_v8 }
 0x535   : > { %v1244_v57 = vpop.xlane.xlu2 %1243 }
 0x536   : > { %v1261_v40 = vmul.f32 0.25, %v1244_v57 }
 0x538   : > { %v1270_v24 = vmul.f32 %v1651_v20, %v1261_v40 }
 0x53d   : > { %v1247_v62 = vpop.xlane.xlu1 %1246 }
 0x53e   : > { %v1262_v3 = vmul.f32 0.25, %v1247_v62 }
 0x540   : > { %v1271_v32 = vmul.f32 %v1649_v12, %v1262_v3 }
 0x545   : > { %v1250_v48 = vpop.xlane.xlu0 %1249 }
 0x546   : > { %v1263_v1 = vmul.f32 0.25, %v1250_v48 }
 0x548   : > { %v1272_v22 = vmul.f32 %v1650_v5, %v1263_v1 }
 0x54a   : > { %v1541_v13 = vpack.i.bf16 %v1271_v32, %v1272_v22 }
 0x54c   : > { %1542 = vrot.lane.b32.xlu2 %v1541_v13, %s1727_s10 }
 0x54d   : > { %v1241_v9 = vpop.xlane.xlu0 %1240  ;;  %v1253_v18 = vpop.xlane.xlu2 %1252 }
 0x54e   : > { %v1260_v14 = vmul.f32 0.25, %v1241_v9  ;;  %v1264_v26 = vmul.f32 0.25, %v1253_v18 }
 0x550   : > { %v1269_v21 = vmul.f32 %v1652_v63, %v1260_v14  ;;  %v1273_v23 = vmul.f32 %v1654_v38, %v1264_v26 }
 0x552   : > { %v1546_v25 = vpack.i.bf16 %v1269_v21, %v1270_v24 }
 0x554   : > { %1547 = vrot.lane.b32.xlu0 %v1546_v25, %s1727_s10  ;;  %1332 = vrot.lane.b32.xlu2 %v1653_v28, %s1724_s9  ;;  %s1416_s9 = sshll.u32 %s215_s25, 3 }
 0x555   : > { %v1256_v10 = vpop.xlane.xlu1 %1255  ;;  %v1235_v54 = vpop.xlane.xlu2 %1234  ;;  %s217_s13 = scalar_lea.vmem [#allocation2], %s1416_s9 }
 0x556   : > { %v1265_v15 = vmul.f32 0.25, %v1256_v10  ;;  %v1232_v36 = vpop.xlane.xlu0 %1231  ;;  %v1258_v34 = vmul.f32 0.25, %v1235_v54  ;;  %s1350_s14 = sshll.u32 %s217_s13, 4  ;;  %s1351_s14 = int_to_ptr.vmem [resolvable:$true] %s1350_s14 }
 0x557   : > { %v1257_v37 = vmul.f32 0.25, %v1232_v36 }
 0x558   : > { %v1274_v41 = vmul.f32 %v1655_v39, %v1265_v15  ;;  %v1267_v43 = vmul.f32 %v1657_v7, %v1258_v34 }
 0x559   : > { %v1266_v33 = vmul.f32 %v1656_v42, %v1257_v37 }
 0x55a   : > { %v1536_v55 = vpack.i.bf16 %v1273_v23, %v1274_v41 }
 0x55c   : > { %1537 = vrot.lane.b32.xlu1 %v1536_v55, %s1727_s10  ;;  %1284 = vrot.lane.b32.xlu0 %v1266_v33, %s1727_s10 }
 0x55d   : > { %v1238_v29 = vpop.xlane.xlu1 %1237 }
 0x55e   : > { %v1259_v45 = vmul.f32 0.25, %v1238_v29 }
 0x560   : > { %v1268_v46 = vmul.f32 %v1658_v44, %v1259_v45 }
 0x562   : > { %v1551_v47 = vpack.i.bf16 %v1267_v43, %v1268_v46 }
 0x564   : > { %1552 = vrot.lane.b32.xlu1 %v1551_v47, %s1727_s10  ;;  %s1679_s10 = scalar_lea.hbm %s2366_s5, 128 }
 0x565   : > { %p1681_p1 = scmp.lt.s32.totalorder %s1679_s10, %s1675_s22 }
 0x567   : > { %p1682_p2 = por %p1681_p1, %p1680_p0 }
 0x569   : > { %p1683_p3 = pnand %p1682_p2, %p1678_p13 }
 0x5a6   : > { %v1543_v49 = vpop.permute.xlu2 %1542 }
 0x5a7   : > { %v1544_v56 = vunpack.i.l.bf16 %v1543_v49  ;;  %v1545_v50 = vunpack.i.h.bf16 %v1543_v49 }
 0x5ae   : > { %v1333_v59 = vpop.permute.xlu2 %1332 }
 0x5c6   : > { %v1548_v30 = vpop.permute.xlu0 %1547 }
 0x5c7   : > { %v1549_v51 = vunpack.i.l.bf16 %v1548_v30  ;;  %v1550_v4 = vunpack.i.h.bf16 %v1548_v30 }
 0x5ce   : > { %v1538_v27 = vpop.permute.xlu1 %1537  ;;  %v1285_v58 = vpop.permute.xlu0 %1284 }
 0x5cf   : > { %v1539_v17 = vunpack.i.l.bf16 %v1538_v27  ;;  %v1540_v11 = vunpack.i.h.bf16 %v1538_v27 }
 0x5d1   : > { %1318 = vmatpush.msra.mxu1 %v1539_v17 }
 0x5d3   : > { %1319 = vmatpush.msra.mxu1 %v1540_v11 }
 0x5d5   : > { %1320 = vmatpush.msra.mxu1 %v1544_v56 }
 0x5d6   : > { %v1553_v16 = vpop.permute.xlu1 %1552 }
 0x5d7   : > { %1321 = vmatpush.msra.mxu1 %v1545_v50  ;;  %v1554_v35 = vunpack.i.l.bf16 %v1553_v16  ;;  %v1555_v53 = vunpack.i.h.bf16 %v1553_v16 }
 0x5d9   : > { %1322 = vmatpush.msra.mxu1 %v1549_v51 }
 0x5db   : > { %1323 = vmatpush.msra.mxu1 %v1550_v4 }
 0x5dd   : > { %1324 = vmatpush.msra.mxu1 %v1554_v35 }
 0x5df   : > { %1325 = vmatpush.msra.mxu1 %v1555_v53 }
 0x5e1   : > { %1326 = vmatpush.msra.mxu1 %v1285_v58 }
 0x5e2   : > { %1485 = vmatmul.msk.f32.vlgmr.msra.gmra.mxu1 %vm1112_vm0, %v2237_v19 }
 0x65f   : > { %v1328_v52 = vpop.f32.mrf.mxu1 }
 0x660   : > { %v1331_v60 = vmax.f32 %v1328_v52, 0.0 }
 0x662   : > { %v1335_v6 = vadd.f32 %v1333_v59, %v1331_v60 }
 0x664   : > { %1336 = vst.msk [vmem:[%s217_s13] sm:$0xff] %vm427_vm2, %v1335_v6 }
 0x665   : > { %1686 = shalt.err (!%p1683_p3)
}
 0x666   : > { %1492 = dma.vmem_to_hbm [thread:$0]  (%p1796_p5), %s1351_s14, 128, %s1353_s15, %s1338_s16  }
 0x667 PF: > { %p1498_p4 = scmp.ge.s32.totalorder %s1721_s21, 2  ;;  %s1364_s25 = sand.u32 1, %s1709_s18  }
 0x668   : > { %s1365_s9 = scalar_lea.sflag [#allocation3], %s1364_s25 }
 0x669   : > { %p1495_p7 = pnand %p1498_p4, %p1800_p6 }
 0x66b   : > { %p1496_p8 = pneg %p1495_p7 }
 0x66d   : > { %1704 = dma.done.wait (%p1496_p8), %s1365_s9, 128  }
 0x66e   : > { %1706 = vsyncadd (%p1496_p8), %s1365_s9, 4294967168  ;;  %p15_p9 = scmp.ge.s32.totalorder %s1783_s24, 18   ;;  %s2371_s18 = smov %s1713_s19 }
 0x66f   : > { %s2372_s19 = smov %s1717_s20  ;;  %s2373_s20 = smov %s1794_s27 }
 0x670   : > { %s2374_s21 = smov %s1783_s24  ;;  %17 = sbr.rel (!%p15_p9) target bundleno = 3 (0x3), region = 75 }
 0x675   :  { %1371 = vsyncpa [#allocation3], 1 }
 0x676   :  { %1373 = vsyncpa [#allocation3 + $0x1], 1 }

</bundles_post_ra>
